<compile_context>
chip_gen: v7x
topology: tpu7x:2x2x1
jax: 0.10.0
libtpu: 0.0.40
codegen_flags: <defaults>
</compile_context>

<pallas_src>
import functools

import jax
import jax.numpy as jnp
from jax.experimental import pallas as pl
from jax.experimental.pallas import tpu as pltpu

START_TAG = "<START>"
STOP_TAG = "<STOP>"
tag_to_ix = {"B": 0, "I": 1, "O": 2, START_TAG: 3, STOP_TAG: 4}

NEG = -10000.0
PAD = -1e30


def _bilstm_crf_kernel(
    x_ref,        # (T, 2E)   bf16, row t = [embeds[t] | embeds[T-1-t]]
    wih_ref,      # (2E, 8H)  bf16 fused/permuted input weights (g-gate pre-scaled by 2)
    b_ref,        # (1, 8H)   f32 fused biases (g-gate pre-scaled by 2)
    whh_ref,      # (2H, 8H)  bf16 block-diagonal recurrent weights (g-gate pre-scaled)
    h0_ref,       # (1, 2H)   f32  [h0_fwd | h0_bwd]
    c0_ref,       # (1, 2H)   f32
    wtag_ref,     # (2H, NT)  f32  hidden2tag.weight.T
    btag_ref,     # (1, NT)   f32
    transA_ref,   # (NTP, NT) f32  transitions[next, prev], next axis padded to 8 with -1e30
    transB_ref,   # (NTP, NT) f32  transitions.T[prev, next], prev axis padded to 8 with -1e30
    tstop_ref,    # (1, NT)   f32  transitions[STOP, :]
    score_ref,    # (1, 1)    f32 out
    path_ref,     # (1, T)    i32 out
    gx_ref,       # (T, 8H)   f32 scratch: precomputed input gate contributions
    hs_ref,       # (T, 2H)   f32 scratch: lstm hidden states (computation order)
    *,
    start_ix,
):
    T = x_ref.shape[0]
    H2 = whh_ref.shape[0]          # 2H
    H = H2 // 2
    NTP, NT = transA_ref.shape

    # ---- 1) fused input projection, both directions, all timesteps (one bf16 MXU matmul)
    gx_ref[...] = (
        jnp.dot(x_ref[...], wih_ref[...], preferred_element_type=jnp.float32)
        + b_ref[...]
    )

    # ---- 2) fused bidirectional LSTM recurrence (one 128-lane gate vreg per step)
    whh = whh_ref[...]                                           # loop-invariant bf16 RHS

    def lstm_body(s, carry):
        h, c = carry                                             # (1, 2H) f32
        g = gx_ref[pl.ds(s, 1), :] + jnp.dot(
            h.astype(jnp.bfloat16), whh, preferred_element_type=jnp.float32)
        sg = jax.nn.sigmoid(g)                                   # single full-width EUP pass
        i_g = sg[:, 0:H2]
        f_g = sg[:, H2:2 * H2]
        o_g = sg[:, 3 * H2:4 * H2]
        g_g = 2.0 * sg[:, 2 * H2:3 * H2] - 1.0                   # tanh(x) = 2*sigmoid(2x) - 1
        c_new = f_g * c + i_g * g_g
        h_new = o_g * jnp.tanh(c_new)
        hs_ref[pl.ds(s, 1), :] = h_new                           # one full-row store per step
        return h_new, c_new

    jax.lax.fori_loop(0, T, lstm_body, (h0_ref[...], c0_ref[...]),
                      unroll=min(T, 16))

    # ---- 3) tag projection; bwd half un-reversed once via an anti-diagonal permutation matmul
    hs = hs_ref[...]                                             # (T, 2H) f32
    r_i = jax.lax.broadcasted_iota(jnp.int32, (T, T), 0)
    c_i = jax.lax.broadcasted_iota(jnp.int32, (T, T), 1)
    rev = jnp.where(r_i + c_i == T - 1, 1.0, 0.0)                # (T, T) anti-identity
    hs_b_pos = jnp.dot(rev, hs[:, H:H2], preferred_element_type=jnp.float32)
    feats = (
        jnp.dot(hs[:, 0:H], wtag_ref[0:H, :], preferred_element_type=jnp.float32)
        + jnp.dot(hs_b_pos, wtag_ref[H:H2, :], preferred_element_type=jnp.float32)
        + btag_ref[...]
    )                                                            # (T, NT) f32

    # ---- 4) Viterbi DP, alternating row/column orientation (no per-step fv transpose)
    lane_nt = jax.lax.broadcasted_iota(jnp.int32, (1, NT), 1)
    lane_prev = jax.lax.broadcasted_iota(jnp.int32, (NTP, NT), 1)
    sub_prev = jax.lax.broadcasted_iota(jnp.int32, (NTP, NT), 0)
    sub_col = jax.lax.broadcasted_iota(jnp.int32, (NTP, 1), 0)
    lane_prev_f = lane_prev.astype(jnp.float32)
    trans_a = transA_ref[...]                                    # [next(padded), prev]
    trans_b = transB_ref[...]                                    # [prev(padded), next]

    # Column-layout emission scores for the even (row->column) steps.  These depend only on
    # feats, so they sit off the serial DP chain.
    feat_col = {
        t: jnp.sum(jnp.where(sub_prev == lane_prev, feats[t:t + 1, :], 0.0),
                   axis=1, keepdims=True)
        for t in range(0, T, 2)
    }

    def step_row_to_col(fv_row, t):
        m = trans_a + fv_row                                     # (NTP, NT): [next, prev]
        best = jnp.max(m, axis=1, keepdims=True)                 # (NTP, 1)
        arg = jnp.min(jnp.where(m == best, lane_prev_f, float(NT)),
                      axis=1, keepdims=True).astype(jnp.int32)   # first-index argmax
        return best + feat_col[t], arg

    def step_col_to_row(fv_col, t):
        m = trans_b + fv_col                                     # (NTP, NT): [prev, next]
        best = jnp.max(m, axis=0, keepdims=True)                 # (1, NT)
        arg = jnp.min(jnp.where(m == best, sub_prev, NT),
                      axis=0, keepdims=True).astype(jnp.int32)
        return best + feats[t:t + 1, :], arg

    fv = jnp.where(lane_nt == start_ix, 0.0, NEG)                # (1, NT)
    bps = []                                                     # per-step backpointers
    for p in range(T // 2):                                      # static unroll (T is small)
        fv_col, bp_even = step_row_to_col(fv, 2 * p)
        bps.append(bp_even)                                      # column layout (NTP, 1)
        fv, bp_odd = step_col_to_row(fv_col, 2 * p + 1)
        bps.append(bp_odd)                                       # row layout (1, NT)
    if T % 2 == 1:
        fv_col, bp_even = step_row_to_col(fv, T - 1)
        bps.append(bp_even)
        # one-time column -> row move for the terminal step
        fv = jnp.sum(jnp.where(sub_prev == lane_prev, fv_col, 0.0),
                     axis=0, keepdims=True)

    # ---- 5) terminal transition + backtrace (direct per-position path stores)
    terminal = fv + tstop_ref[...]                               # (1, NT)
    path_score = jnp.max(terminal)
    best = jnp.min(jnp.where(terminal == path_score, lane_nt, NT)).astype(jnp.int32)

    score_ref[...] = path_score.reshape(1, 1)
    path_ref[:, T - 1:T] = best.reshape(1, 1)

    for t in range(T - 1, 0, -1):
        bp_t = bps[t]
        if t % 2 == 0:   # column layout: pick sublane `best`
            best = jnp.sum(jnp.where(sub_col == best, bp_t, 0)).astype(jnp.int32)
        else:            # row layout: pick lane `best`
            best = jnp.sum(jnp.where(lane_nt == best, bp_t, 0)).astype(jnp.int32)
        path_ref[:, t - 1:t] = best.reshape(1, 1)
    # TODO(synk): the PyTorch `assert start == START_TAG` sanity check is dropped
    # (bp[0][path[0]] == START holds by construction for finite inputs).


def _place_gate_cols(wT, direction, H):
    """Scatter PyTorch [i|f|g|o] gate columns (each H wide) into the fused 8H layout
    [i_f i_b | f_f f_b | g_f g_b | o_f o_b]."""
    rows = wT.shape[0]
    out = jnp.zeros((rows, 8 * H), wT.dtype)
    for gate in range(4):
        col0 = gate * 2 * H + direction * H
        out = out.at[:, col0:col0 + H].set(wT[:, gate * H:(gate + 1) * H])
    return out


def _place_gate_bias(b, direction, H):
    out = jnp.zeros((8 * H,), b.dtype)
    for gate in range(4):
        col0 = gate * 2 * H + direction * H
        out = out.at[col0:col0 + H].set(b[gate * H:(gate + 1) * H])
    return out


def prepare_fused_params(params, tag_to_ix):
    """One-time (per parameter set) weight fusion / permutation / padding.
    Cache the result and reuse across calls; none of this runs on the per-sentence path."""
    H = params["w_hh_f"].shape[1]
    NT = params["transitions"].shape[0]
    NTP = 8

    wih = jnp.concatenate(
        [_place_gate_cols(params["w_ih_f"].T, 0, H),
         _place_gate_cols(params["w_ih_b"].T, 1, H)], axis=0)      # (2E, 8H)
    whh = jnp.concatenate(
        [_place_gate_cols(params["w_hh_f"].T, 0, H),
         _place_gate_cols(params["w_hh_b"].T, 1, H)], axis=0)      # (2H, 8H) block-diagonal
    b = (_place_gate_bias(params["b_ih_f"] + params["b_hh_f"], 0, H)
         + _place_gate_bias(params["b_ih_b"] + params["b_hh_b"], 1, H)).reshape(1, -1)

    # tanh-via-sigmoid: pre-scale the g-gate (columns [4H:6H]) by 2 so the kernel reuses
    # its single full-width sigmoid:  tanh(x) = 2*sigmoid(2x) - 1.
    g0, g1 = 4 * H, 6 * H
    wih = wih.at[:, g0:g1].multiply(2.0)
    whh = whh.at[:, g0:g1].multiply(2.0)
    b = b.at[:, g0:g1].multiply(2.0)

    trans = params["transitions"].astype(jnp.float32)
    pad = jnp.full((NTP - NT, NT), PAD, jnp.float32)

    return {
        "embedding": params["embedding"].astype(jnp.float32),
        "wih": wih.astype(jnp.bfloat16),        # bf16 operands, f32 accumulation
        "whh": whh.astype(jnp.bfloat16),
        "b": b.astype(jnp.float32),
        "h0": params["h0"].reshape(1, 2 * H).astype(jnp.float32),  # [fwd | bwd]
        "c0": params["c0"].reshape(1, 2 * H).astype(jnp.float32),
        "wtag": params["w_tag"].T.astype(jnp.float32),             # (2H, NT)
        "btag": params["b_tag"].reshape(1, -1).astype(jnp.float32),
        "trans_A": jnp.concatenate([trans, pad], axis=0),          # [next(pad), prev]
        "trans_B": jnp.concatenate([trans.T, pad], axis=0),        # [prev(pad), next]
        "trans_stop": trans[tag_to_ix[STOP_TAG]].reshape(1, -1),
    }


def bilstm_crf_forward(sentence, fused, *, start_ix):
    """Per-sentence forward (Viterbi decode): embedding gather + one pallas_call."""
    T = int(sentence.shape[0])
    H = fused["h0"].shape[1] // 2

    embeds = fused["embedding"][sentence]                          # (T, E)
    x = jnp.concatenate([embeds, embeds[::-1]], axis=1).astype(jnp.bfloat16)

    kernel = functools.partial(_bilstm_crf_kernel, start_ix=start_ix)
    vmem = pl.BlockSpec(memory_space=pltpu.MemorySpace.VMEM)
    score, path = pl.pallas_call(
        kernel,
        out_shape=(
            jax.ShapeDtypeStruct((1, 1), jnp.float32),
            jax.ShapeDtypeStruct((1, T), jnp.int32),
        ),
        in_specs=[vmem] * 11,
        out_specs=(vmem, vmem),
        scratch_shapes=[
            pltpu.VMEM((T, 8 * H), jnp.float32),   # gx (input gate contributions)
            pltpu.VMEM((T, 2 * H), jnp.float32),   # lstm hidden states (computation order)
        ],
    )(x, fused["wih"], fused["b"], fused["whh"], fused["h0"], fused["c0"],
      fused["wtag"], fused["btag"], fused["trans_A"], fused["trans_B"],
      fused["trans_stop"])
    return score[0, 0], path[0]


def make_params(key, vocab_size, embedding_dim, hidden_dim, tagset_size):
    H = hidden_dim // 2
    ks = jax.random.split(key, 16)
    n = lambda k, shape: jax.random.normal(k, shape, dtype=jnp.float32) * 0.1

    transitions = jax.random.normal(ks[0], (tagset_size, tagset_size), dtype=jnp.float32)
    transitions = transitions.at[tag_to_ix[START_TAG], :].set(-10000.0)
    transitions = transitions.at[:, tag_to_ix[STOP_TAG]].set(-10000.0)

    return {
        "embedding": jax.random.normal(ks[1], (vocab_size, embedding_dim), dtype=jnp.float32),
        # PyTorch LSTM gate order: i, f, g, o  -> weight_ih (4H, E), weight_hh (4H, H)
        "w_ih_f": n(ks[2], (4 * H, embedding_dim)),
        "w_hh_f": n(ks[3], (4 * H, H)),
        "b_ih_f": n(ks[4], (4 * H,)),
        "b_hh_f": n(ks[5], (4 * H,)),
        "w_ih_b": n(ks[6], (4 * H, embedding_dim)),
        "w_hh_b": n(ks[7], (4 * H, H)),
        "b_ih_b": n(ks[8], (4 * H,)),
        "b_hh_b": n(ks[9], (4 * H,)),
        # init_hidden(): randn(2, 1, H) -> deterministic (2, H) here
        "h0": n(ks[10], (2, H)),
        "c0": n(ks[11], (2, H)),
        # hidden2tag: Linear(hidden_dim, tagset_size)
        "w_tag": n(ks[12], (tagset_size, hidden_dim)),
        "b_tag": n(ks[13], (tagset_size,)),
        "transitions": transitions,
    }


if __name__ == "__main__":
    VOCAB = 20
    EMBED_DIM = 32
    HIDDEN_DIM = 32
    SEQ_LEN = 8
    TAGSET = len(tag_to_ix)

    key = jax.random.PRNGKey(0)
    k_params, k_sent = jax.random.split(key)
    params = make_params(k_params, VOCAB, EMBED_DIM, HIDDEN_DIM, TAGSET)

    # Weight fusion / permutation done ONCE per parameter set (hoisted off the call path).
    fused = prepare_fused_params(params, tag_to_ix)
    fwd = jax.jit(functools.partial(bilstm_crf_forward, start_ix=tag_to_ix[START_TAG]))

    sentence = jax.random.randint(k_sent, (SEQ_LEN,), 0, VOCAB, dtype=jnp.int32)

    score, tag_seq = fwd(sentence, fused)
    jax.block_until_ready(score)
    jax.block_until_ready(tag_seq)
    print("KERNEL_OK")
</pallas_src>

<mosaic_0001>
module attributes {stable_mosaic.version = 11 : i64} {
  func.func @_bilstm_crf_kernel(%arg0: memref<8x64xbf16, #tpu.memory_space<vmem>>, %arg1: memref<64x128xbf16, #tpu.memory_space<vmem>>, %arg2: memref<1x128xf32, #tpu.memory_space<vmem>>, %arg3: memref<32x128xbf16, #tpu.memory_space<vmem>>, %arg4: memref<1x32xf32, #tpu.memory_space<vmem>>, %arg5: memref<1x32xf32, #tpu.memory_space<vmem>>, %arg6: memref<32x5xf32, #tpu.memory_space<vmem>>, %arg7: memref<1x5xf32, #tpu.memory_space<vmem>>, %arg8: memref<8x5xf32, #tpu.memory_space<vmem>>, %arg9: memref<8x5xf32, #tpu.memory_space<vmem>>, %arg10: memref<1x5xf32, #tpu.memory_space<vmem>>, %arg11: memref<1x1xf32, #tpu.memory_space<vmem>>, %arg12: memref<1x8xi32, #tpu.memory_space<vmem>>, %arg13: memref<8x128xf32, #tpu.memory_space<vmem>>, %arg14: memref<8x32xf32, #tpu.memory_space<vmem>>) attributes {dimension_semantics = [], scalar_prefetch = 0 : i64, scratch_operands = 2 : i64, tpu.core_type = #tpu.core_type<tc>} {
    %c0 = arith.constant 0 : index
    %c0_0 = arith.constant 0 : index
    %0 = vector.load %arg0[%c0, %c0_0] : memref<8x64xbf16, #tpu.memory_space<vmem>>, vector<8x64xbf16>
    %c0_1 = arith.constant 0 : index
    %c0_2 = arith.constant 0 : index
    %1 = vector.load %arg1[%c0_1, %c0_2] : memref<64x128xbf16, #tpu.memory_space<vmem>>, vector<64x128xbf16>
    %cst = arith.constant dense<0.000000e+00> : vector<8x128xf32>
    %2 = tpu.matmul %0, %1, %cst {dimension_numbers = #tpu.dot_dimension_numbers<[1], [0], [0], [1], [0, 0, 1, 1], [], []>} : vector<8x64xbf16>, vector<64x128xbf16>, vector<8x128xf32> -> vector<8x128xf32>
    %c0_3 = arith.constant 0 : index
    %c0_4 = arith.constant 0 : index
    %3 = vector.load %arg2[%c0_3, %c0_4] : memref<1x128xf32, #tpu.memory_space<vmem>>, vector<1x128xf32>
    %4 = vector.broadcast %3 : vector<1x128xf32> to vector<8x128xf32>
    %5 = arith.addf %2, %4 : vector<8x128xf32>
    %c0_5 = arith.constant 0 : index
    %c0_6 = arith.constant 0 : index
    %6 = vector.load %arg13[%c0_5, %c0_6] : memref<8x128xf32, #tpu.memory_space<vmem>>, vector<8x128xf32>
    tpu.vector_store %arg13[%c0_5, %c0_6], %5 {strides = array<i32>} : memref<8x128xf32, #tpu.memory_space<vmem>>, vector<8x128xf32>,
    %c0_7 = arith.constant 0 : index
    %c0_8 = arith.constant 0 : index
    %7 = vector.load %arg3[%c0_7, %c0_8] : memref<32x128xbf16, #tpu.memory_space<vmem>>, vector<32x128xbf16>
    %c0_9 = arith.constant 0 : index
    %c0_10 = arith.constant 0 : index
    %8 = vector.load %arg4[%c0_9, %c0_10] : memref<1x32xf32, #tpu.memory_space<vmem>>, vector<1x32xf32>
    %c0_11 = arith.constant 0 : index
    %c0_12 = arith.constant 0 : index
    %9 = vector.load %arg5[%c0_11, %c0_12] : memref<1x32xf32, #tpu.memory_space<vmem>>, vector<1x32xf32>
    %c0_i32 = arith.constant 0 : i32
    %10 = arith.index_cast %c0_i32 : i32 to index
    %c0_13 = arith.constant 0 : index
    %11 = vector.load %arg13[%10, %c0_13] : memref<8x128xf32, #tpu.memory_space<vmem>>, vector<1x128xf32>
    %12 = arith.truncf %8 : vector<1x32xf32> to vector<1x32xbf16>
    %cst_14 = arith.constant dense<0.000000e+00> : vector<1x128xf32>
    %13 = tpu.matmul %12, %7, %cst_14 {dimension_numbers = #tpu.dot_dimension_numbers<[1], [0], [0], [1], [0, 0, 1, 1], [], []>} : vector<1x32xbf16>, vector<32x128xbf16>, vector<1x128xf32> -> vector<1x128xf32>
    %14 = arith.addf %11, %13 : vector<1x128xf32>
    %15 = arith.negf %14 : vector<1x128xf32>
    %16 = math.exp %15 : vector<1x128xf32>
    %cst_15 = arith.constant 1.000000e+00 : f32
    %17 = vector.broadcast %cst_15 : f32 to vector<1x128xf32>
    %18 = arith.addf %17, %16 : vector<1x128xf32>
    %19 = arith.divf %17, %18 : vector<1x128xf32>
    %20 = vector.extract_strided_slice %19 {offsets = [0, 0], sizes = [1, 32], strides = [1, 1]} : vector<1x128xf32> to vector<1x32xf32>
    %21 = vector.extract_strided_slice %19 {offsets = [0, 32], sizes = [1, 32], strides = [1, 1]} : vector<1x128xf32> to vector<1x32xf32>
    %22 = vector.extract_strided_slice %19 {offsets = [0, 96], sizes = [1, 32], strides = [1, 1]} : vector<1x128xf32> to vector<1x32xf32>
    %23 = vector.extract_strided_slice %19 {offsets = [0, 64], sizes = [1, 32], strides = [1, 1]} : vector<1x128xf32> to vector<1x32xf32>
    %cst_16 = arith.constant 2.000000e+00 : f32
    %24 = vector.broadcast %cst_16 : f32 to vector<1x32xf32>
    %25 = arith.mulf %24, %23 : vector<1x32xf32>
    %cst_17 = arith.constant 1.000000e+00 : f32
    %26 = vector.broadcast %cst_17 : f32 to vector<1x32xf32>
    %27 = arith.subf %25, %26 : vector<1x32xf32>
    %28 = arith.mulf %21, %9 : vector<1x32xf32>
    %29 = arith.mulf %20, %27 : vector<1x32xf32>
    %30 = arith.addf %28, %29 : vector<1x32xf32>
    %31 = math.tanh %30 : vector<1x32xf32>
    %32 = arith.mulf %22, %31 : vector<1x32xf32>
    %33 = arith.index_cast %c0_i32 : i32 to index
    %c0_18 = arith.constant 0 : index
    %34 = vector.load %arg14[%33, %c0_18] : memref<8x32xf32, #tpu.memory_space<vmem>>, vector<1x32xf32>
    tpu.vector_store %arg14[%33, %c0_18], %32 {strides = array<i32>} : memref<8x32xf32, #tpu.memory_space<vmem>>, vector<1x32xf32>,
    %c1_i32 = arith.constant 1 : i32
    %35 = arith.index_cast %c1_i32 : i32 to index
    %c0_19 = arith.constant 0 : index
    %36 = vector.load %arg13[%35, %c0_19] : memref<8x128xf32, #tpu.memory_space<vmem>>, vector<1x128xf32>
    %37 = arith.truncf %32 : vector<1x32xf32> to vector<1x32xbf16>
    %cst_20 = arith.constant dense<0.000000e+00> : vector<1x128xf32>
    %38 = tpu.matmul %37, %7, %cst_20 {dimension_numbers = #tpu.dot_dimension_numbers<[1], [0], [0], [1], [0, 0, 1, 1], [], []>} : vector<1x32xbf16>, vector<32x128xbf16>, vector<1x128xf32> -> vector<1x128xf32>
    %39 = arith.addf %36, %38 : vector<1x128xf32>
    %40 = arith.negf %39 : vector<1x128xf32>
    %41 = math.exp %40 : vector<1x128xf32>
    %cst_21 = arith.constant 1.000000e+00 : f32
    %42 = vector.broadcast %cst_21 : f32 to vector<1x128xf32>
    %43 = arith.addf %42, %41 : vector<1x128xf32>
    %44 = arith.divf %42, %43 : vector<1x128xf32>
    %45 = vector.extract_strided_slice %44 {offsets = [0, 0], sizes = [1, 32], strides = [1, 1]} : vector<1x128xf32> to vector<1x32xf32>
    %46 = vector.extract_strided_slice %44 {offsets = [0, 32], sizes = [1, 32], strides = [1, 1]} : vector<1x128xf32> to vector<1x32xf32>
    %47 = vector.extract_strided_slice %44 {offsets = [0, 96], sizes = [1, 32], strides = [1, 1]} : vector<1x128xf32> to vector<1x32xf32>
    %48 = vector.extract_strided_slice %44 {offsets = [0, 64], sizes = [1, 32], strides = [1, 1]} : vector<1x128xf32> to vector<1x32xf32>
    %cst_22 = arith.constant 2.000000e+00 : f32
    %49 = vector.broadcast %cst_22 : f32 to vector<1x32xf32>
    %50 = arith.mulf %49, %48 : vector<1x32xf32>
    %cst_23 = arith.constant 1.000000e+00 : f32
    %51 = vector.broadcast %cst_23 : f32 to vector<1x32xf32>
    %52 = arith.subf %50, %51 : vector<1x32xf32>
    %53 = arith.mulf %46, %30 : vector<1x32xf32>
    %54 = arith.mulf %45, %52 : vector<1x32xf32>
    %55 = arith.addf %53, %54 : vector<1x32xf32>
    %56 = math.tanh %55 : vector<1x32xf32>
    %57 = arith.mulf %47, %56 : vector<1x32xf32>
    %58 = arith.index_cast %c1_i32 : i32 to index
    %c0_24 = arith.constant 0 : index
    %59 = vector.load %arg14[%58, %c0_24] : memref<8x32xf32, #tpu.memory_space<vmem>>, vector<1x32xf32>
    tpu.vector_store %arg14[%58, %c0_24], %57 {strides = array<i32>} : memref<8x32xf32, #tpu.memory_space<vmem>>, vector<1x32xf32>,
    %c2_i32 = arith.constant 2 : i32
    %60 = arith.index_cast %c2_i32 : i32 to index
    %c0_25 = arith.constant 0 : index
    %61 = vector.load %arg13[%60, %c0_25] : memref<8x128xf32, #tpu.memory_space<vmem>>, vector<1x128xf32>
    %62 = arith.truncf %57 : vector<1x32xf32> to vector<1x32xbf16>
    %cst_26 = arith.constant dense<0.000000e+00> : vector<1x128xf32>
    %63 = tpu.matmul %62, %7, %cst_26 {dimension_numbers = #tpu.dot_dimension_numbers<[1], [0], [0], [1], [0, 0, 1, 1], [], []>} : vector<1x32xbf16>, vector<32x128xbf16>, vector<1x128xf32> -> vector<1x128xf32>
    %64 = arith.addf %61, %63 : vector<1x128xf32>
    %65 = arith.negf %64 : vector<1x128xf32>
    %66 = math.exp %65 : vector<1x128xf32>
    %cst_27 = arith.constant 1.000000e+00 : f32
    %67 = vector.broadcast %cst_27 : f32 to vector<1x128xf32>
    %68 = arith.addf %67, %66 : vector<1x128xf32>
    %69 = arith.divf %67, %68 : vector<1x128xf32>
    %70 = vector.extract_strided_slice %69 {offsets = [0, 0], sizes = [1, 32], strides = [1, 1]} : vector<1x128xf32> to vector<1x32xf32>
    %71 = vector.extract_strided_slice %69 {offsets = [0, 32], sizes = [1, 32], strides = [1, 1]} : vector<1x128xf32> to vector<1x32xf32>
    %72 = vector.extract_strided_slice %69 {offsets = [0, 96], sizes = [1, 32], strides = [1, 1]} : vector<1x128xf32> to vector<1x32xf32>
    %73 = vector.extract_strided_slice %69 {offsets = [0, 64], sizes = [1, 32], strides = [1, 1]} : vector<1x128xf32> to vector<1x32xf32>
    %cst_28 = arith.constant 2.000000e+00 : f32
    %74 = vector.broadcast %cst_28 : f32 to vector<1x32xf32>
    %75 = arith.mulf %74, %73 : vector<1x32xf32>
    %cst_29 = arith.constant 1.000000e+00 : f32
    %76 = vector.broadcast %cst_29 : f32 to vector<1x32xf32>
    %77 = arith.subf %75, %76 : vector<1x32xf32>
    %78 = arith.mulf %71, %55 : vector<1x32xf32>
    %79 = arith.mulf %70, %77 : vector<1x32xf32>
    %80 = arith.addf %78, %79 : vector<1x32xf32>
    %81 = math.tanh %80 : vector<1x32xf32>
    %82 = arith.mulf %72, %81 : vector<1x32xf32>
    %83 = arith.index_cast %c2_i32 : i32 to index
    %c0_30 = arith.constant 0 : index
    %84 = vector.load %arg14[%83, %c0_30] : memref<8x32xf32, #tpu.memory_space<vmem>>, vector<1x32xf32>
    tpu.vector_store %arg14[%83, %c0_30], %82 {strides = array<i32>} : memref<8x32xf32, #tpu.memory_space<vmem>>, vector<1x32xf32>,
    %c3_i32 = arith.constant 3 : i32
    %85 = arith.index_cast %c3_i32 : i32 to index
    %c0_31 = arith.constant 0 : index
    %86 = vector.load %arg13[%85, %c0_31] : memref<8x128xf32, #tpu.memory_space<vmem>>, vector<1x128xf32>
    %87 = arith.truncf %82 : vector<1x32xf32> to vector<1x32xbf16>
    %cst_32 = arith.constant dense<0.000000e+00> : vector<1x128xf32>
    %88 = tpu.matmul %87, %7, %cst_32 {dimension_numbers = #tpu.dot_dimension_numbers<[1], [0], [0], [1], [0, 0, 1, 1], [], []>} : vector<1x32xbf16>, vector<32x128xbf16>, vector<1x128xf32> -> vector<1x128xf32>
    %89 = arith.addf %86, %88 : vector<1x128xf32>
    %90 = arith.negf %89 : vector<1x128xf32>
    %91 = math.exp %90 : vector<1x128xf32>
    %cst_33 = arith.constant 1.000000e+00 : f32
    %92 = vector.broadcast %cst_33 : f32 to vector<1x128xf32>
    %93 = arith.addf %92, %91 : vector<1x128xf32>
    %94 = arith.divf %92, %93 : vector<1x128xf32>
    %95 = vector.extract_strided_slice %94 {offsets = [0, 0], sizes = [1, 32], strides = [1, 1]} : vector<1x128xf32> to vector<1x32xf32>
    %96 = vector.extract_strided_slice %94 {offsets = [0, 32], sizes = [1, 32], strides = [1, 1]} : vector<1x128xf32> to vector<1x32xf32>
    %97 = vector.extract_strided_slice %94 {offsets = [0, 96], sizes = [1, 32], strides = [1, 1]} : vector<1x128xf32> to vector<1x32xf32>
    %98 = vector.extract_strided_slice %94 {offsets = [0, 64], sizes = [1, 32], strides = [1, 1]} : vector<1x128xf32> to vector<1x32xf32>
    %cst_34 = arith.constant 2.000000e+00 : f32
    %99 = vector.broadcast %cst_34 : f32 to vector<1x32xf32>
    %100 = arith.mulf %99, %98 : vector<1x32xf32>
    %cst_35 = arith.constant 1.000000e+00 : f32
    %101 = vector.broadcast %cst_35 : f32 to vector<1x32xf32>
    %102 = arith.subf %100, %101 : vector<1x32xf32>
    %103 = arith.mulf %96, %80 : vector<1x32xf32>
    %104 = arith.mulf %95, %102 : vector<1x32xf32>
    %105 = arith.addf %103, %104 : vector<1x32xf32>
    %106 = math.tanh %105 : vector<1x32xf32>
    %107 = arith.mulf %97, %106 : vector<1x32xf32>
    %108 = arith.index_cast %c3_i32 : i32 to index
    %c0_36 = arith.constant 0 : index
    %109 = vector.load %arg14[%108, %c0_36] : memref<8x32xf32, #tpu.memory_space<vmem>>, vector<1x32xf32>
    tpu.vector_store %arg14[%108, %c0_36], %107 {strides = array<i32>} : memref<8x32xf32, #tpu.memory_space<vmem>>, vector<1x32xf32>,
    %c4_i32 = arith.constant 4 : i32
    %110 = arith.index_cast %c4_i32 : i32 to index
    %c0_37 = arith.constant 0 : index
    %111 = vector.load %arg13[%110, %c0_37] : memref<8x128xf32, #tpu.memory_space<vmem>>, vector<1x128xf32>
    %112 = arith.truncf %107 : vector<1x32xf32> to vector<1x32xbf16>
    %cst_38 = arith.constant dense<0.000000e+00> : vector<1x128xf32>
    %113 = tpu.matmul %112, %7, %cst_38 {dimension_numbers = #tpu.dot_dimension_numbers<[1], [0], [0], [1], [0, 0, 1, 1], [], []>} : vector<1x32xbf16>, vector<32x128xbf16>, vector<1x128xf32> -> vector<1x128xf32>
    %114 = arith.addf %111, %113 : vector<1x128xf32>
    %115 = arith.negf %114 : vector<1x128xf32>
    %116 = math.exp %115 : vector<1x128xf32>
    %cst_39 = arith.constant 1.000000e+00 : f32
    %117 = vector.broadcast %cst_39 : f32 to vector<1x128xf32>
    %118 = arith.addf %117, %116 : vector<1x128xf32>
    %119 = arith.divf %117, %118 : vector<1x128xf32>
    %120 = vector.extract_strided_slice %119 {offsets = [0, 0], sizes = [1, 32], strides = [1, 1]} : vector<1x128xf32> to vector<1x32xf32>
    %121 = vector.extract_strided_slice %119 {offsets = [0, 32], sizes = [1, 32], strides = [1, 1]} : vector<1x128xf32> to vector<1x32xf32>
    %122 = vector.extract_strided_slice %119 {offsets = [0, 96], sizes = [1, 32], strides = [1, 1]} : vector<1x128xf32> to vector<1x32xf32>
    %123 = vector.extract_strided_slice %119 {offsets = [0, 64], sizes = [1, 32], strides = [1, 1]} : vector<1x128xf32> to vector<1x32xf32>
    %cst_40 = arith.constant 2.000000e+00 : f32
    %124 = vector.broadcast %cst_40 : f32 to vector<1x32xf32>
    %125 = arith.mulf %124, %123 : vector<1x32xf32>
    %cst_41 = arith.constant 1.000000e+00 : f32
    %126 = vector.broadcast %cst_41 : f32 to vector<1x32xf32>
    %127 = arith.subf %125, %126 : vector<1x32xf32>
    %128 = arith.mulf %121, %105 : vector<1x32xf32>
    %129 = arith.mulf %120, %127 : vector<1x32xf32>
    %130 = arith.addf %128, %129 : vector<1x32xf32>
    %131 = math.tanh %130 : vector<1x32xf32>
    %132 = arith.mulf %122, %131 : vector<1x32xf32>
    %133 = arith.index_cast %c4_i32 : i32 to index
    %c0_42 = arith.constant 0 : index
    %134 = vector.load %arg14[%133, %c0_42] : memref<8x32xf32, #tpu.memory_space<vmem>>, vector<1x32xf32>
    tpu.vector_store %arg14[%133, %c0_42], %132 {strides = array<i32>} : memref<8x32xf32, #tpu.memory_space<vmem>>, vector<1x32xf32>,
    %c5_i32 = arith.constant 5 : i32
    %135 = arith.index_cast %c5_i32 : i32 to index
    %c0_43 = arith.constant 0 : index
    %136 = vector.load %arg13[%135, %c0_43] : memref<8x128xf32, #tpu.memory_space<vmem>>, vector<1x128xf32>
    %137 = arith.truncf %132 : vector<1x32xf32> to vector<1x32xbf16>
    %cst_44 = arith.constant dense<0.000000e+00> : vector<1x128xf32>
    %138 = tpu.matmul %137, %7, %cst_44 {dimension_numbers = #tpu.dot_dimension_numbers<[1], [0], [0], [1], [0, 0, 1, 1], [], []>} : vector<1x32xbf16>, vector<32x128xbf16>, vector<1x128xf32> -> vector<1x128xf32>
    %139 = arith.addf %136, %138 : vector<1x128xf32>
    %140 = arith.negf %139 : vector<1x128xf32>
    %141 = math.exp %140 : vector<1x128xf32>
    %cst_45 = arith.constant 1.000000e+00 : f32
    %142 = vector.broadcast %cst_45 : f32 to vector<1x128xf32>
    %143 = arith.addf %142, %141 : vector<1x128xf32>
    %144 = arith.divf %142, %143 : vector<1x128xf32>
    %145 = vector.extract_strided_slice %144 {offsets = [0, 0], sizes = [1, 32], strides = [1, 1]} : vector<1x128xf32> to vector<1x32xf32>
    %146 = vector.extract_strided_slice %144 {offsets = [0, 32], sizes = [1, 32], strides = [1, 1]} : vector<1x128xf32> to vector<1x32xf32>
    %147 = vector.extract_strided_slice %144 {offsets = [0, 96], sizes = [1, 32], strides = [1, 1]} : vector<1x128xf32> to vector<1x32xf32>
    %148 = vector.extract_strided_slice %144 {offsets = [0, 64], sizes = [1, 32], strides = [1, 1]} : vector<1x128xf32> to vector<1x32xf32>
    %cst_46 = arith.constant 2.000000e+00 : f32
    %149 = vector.broadcast %cst_46 : f32 to vector<1x32xf32>
    %150 = arith.mulf %149, %148 : vector<1x32xf32>
    %cst_47 = arith.constant 1.000000e+00 : f32
    %151 = vector.broadcast %cst_47 : f32 to vector<1x32xf32>
    %152 = arith.subf %150, %151 : vector<1x32xf32>
    %153 = arith.mulf %146, %130 : vector<1x32xf32>
    %154 = arith.mulf %145, %152 : vector<1x32xf32>
    %155 = arith.addf %153, %154 : vector<1x32xf32>
    %156 = math.tanh %155 : vector<1x32xf32>
    %157 = arith.mulf %147, %156 : vector<1x32xf32>
    %158 = arith.index_cast %c5_i32 : i32 to index
    %c0_48 = arith.constant 0 : index
    %159 = vector.load %arg14[%158, %c0_48] : memref<8x32xf32, #tpu.memory_space<vmem>>, vector<1x32xf32>
    tpu.vector_store %arg14[%158, %c0_48], %157 {strides = array<i32>} : memref<8x32xf32, #tpu.memory_space<vmem>>, vector<1x32xf32>,
    %c6_i32 = arith.constant 6 : i32
    %160 = arith.index_cast %c6_i32 : i32 to index
    %c0_49 = arith.constant 0 : index
    %161 = vector.load %arg13[%160, %c0_49] : memref<8x128xf32, #tpu.memory_space<vmem>>, vector<1x128xf32>
    %162 = arith.truncf %157 : vector<1x32xf32> to vector<1x32xbf16>
    %cst_50 = arith.constant dense<0.000000e+00> : vector<1x128xf32>
    %163 = tpu.matmul %162, %7, %cst_50 {dimension_numbers = #tpu.dot_dimension_numbers<[1], [0], [0], [1], [0, 0, 1, 1], [], []>} : vector<1x32xbf16>, vector<32x128xbf16>, vector<1x128xf32> -> vector<1x128xf32>
    %164 = arith.addf %161, %163 : vector<1x128xf32>
    %165 = arith.negf %164 : vector<1x128xf32>
    %166 = math.exp %165 : vector<1x128xf32>
    %cst_51 = arith.constant 1.000000e+00 : f32
    %167 = vector.broadcast %cst_51 : f32 to vector<1x128xf32>
    %168 = arith.addf %167, %166 : vector<1x128xf32>
    %169 = arith.divf %167, %168 : vector<1x128xf32>
    %170 = vector.extract_strided_slice %169 {offsets = [0, 0], sizes = [1, 32], strides = [1, 1]} : vector<1x128xf32> to vector<1x32xf32>
    %171 = vector.extract_strided_slice %169 {offsets = [0, 32], sizes = [1, 32], strides = [1, 1]} : vector<1x128xf32> to vector<1x32xf32>
    %172 = vector.extract_strided_slice %169 {offsets = [0, 96], sizes = [1, 32], strides = [1, 1]} : vector<1x128xf32> to vector<1x32xf32>
    %173 = vector.extract_strided_slice %169 {offsets = [0, 64], sizes = [1, 32], strides = [1, 1]} : vector<1x128xf32> to vector<1x32xf32>
    %cst_52 = arith.constant 2.000000e+00 : f32
    %174 = vector.broadcast %cst_52 : f32 to vector<1x32xf32>
    %175 = arith.mulf %174, %173 : vector<1x32xf32>
    %cst_53 = arith.constant 1.000000e+00 : f32
    %176 = vector.broadcast %cst_53 : f32 to vector<1x32xf32>
    %177 = arith.subf %175, %176 : vector<1x32xf32>
    %178 = arith.mulf %171, %155 : vector<1x32xf32>
    %179 = arith.mulf %170, %177 : vector<1x32xf32>
    %180 = arith.addf %178, %179 : vector<1x32xf32>
    %181 = math.tanh %180 : vector<1x32xf32>
    %182 = arith.mulf %172, %181 : vector<1x32xf32>
    %183 = arith.index_cast %c6_i32 : i32 to index
    %c0_54 = arith.constant 0 : index
    %184 = vector.load %arg14[%183, %c0_54] : memref<8x32xf32, #tpu.memory_space<vmem>>, vector<1x32xf32>
    tpu.vector_store %arg14[%183, %c0_54], %182 {strides = array<i32>} : memref<8x32xf32, #tpu.memory_space<vmem>>, vector<1x32xf32>,
    %c7_i32 = arith.constant 7 : i32
    %185 = arith.index_cast %c7_i32 : i32 to index
    %c0_55 = arith.constant 0 : index
    %186 = vector.load %arg13[%185, %c0_55] : memref<8x128xf32, #tpu.memory_space<vmem>>, vector<1x128xf32>
    %187 = arith.truncf %182 : vector<1x32xf32> to vector<1x32xbf16>
    %cst_56 = arith.constant dense<0.000000e+00> : vector<1x128xf32>
    %188 = tpu.matmul %187, %7, %cst_56 {dimension_numbers = #tpu.dot_dimension_numbers<[1], [0], [0], [1], [0, 0, 1, 1], [], []>} : vector<1x32xbf16>, vector<32x128xbf16>, vector<1x128xf32> -> vector<1x128xf32>
    %189 = arith.addf %186, %188 : vector<1x128xf32>
    %190 = arith.negf %189 : vector<1x128xf32>
    %191 = math.exp %190 : vector<1x128xf32>
    %cst_57 = arith.constant 1.000000e+00 : f32
    %192 = vector.broadcast %cst_57 : f32 to vector<1x128xf32>
    %193 = arith.addf %192, %191 : vector<1x128xf32>
    %194 = arith.divf %192, %193 : vector<1x128xf32>
    %195 = vector.extract_strided_slice %194 {offsets = [0, 0], sizes = [1, 32], strides = [1, 1]} : vector<1x128xf32> to vector<1x32xf32>
    %196 = vector.extract_strided_slice %194 {offsets = [0, 32], sizes = [1, 32], strides = [1, 1]} : vector<1x128xf32> to vector<1x32xf32>
    %197 = vector.extract_strided_slice %194 {offsets = [0, 96], sizes = [1, 32], strides = [1, 1]} : vector<1x128xf32> to vector<1x32xf32>
    %198 = vector.extract_strided_slice %194 {offsets = [0, 64], sizes = [1, 32], strides = [1, 1]} : vector<1x128xf32> to vector<1x32xf32>
    %cst_58 = arith.constant 2.000000e+00 : f32
    %199 = vector.broadcast %cst_58 : f32 to vector<1x32xf32>
    %200 = arith.mulf %199, %198 : vector<1x32xf32>
    %cst_59 = arith.constant 1.000000e+00 : f32
    %201 = vector.broadcast %cst_59 : f32 to vector<1x32xf32>
    %202 = arith.subf %200, %201 : vector<1x32xf32>
    %203 = arith.mulf %196, %180 : vector<1x32xf32>
    %204 = arith.mulf %195, %202 : vector<1x32xf32>
    %205 = arith.addf %203, %204 : vector<1x32xf32>
    %206 = math.tanh %205 : vector<1x32xf32>
    %207 = arith.mulf %197, %206 : vector<1x32xf32>
    %208 = arith.index_cast %c7_i32 : i32 to index
    %c0_60 = arith.constant 0 : index
    %209 = vector.load %arg14[%208, %c0_60] : memref<8x32xf32, #tpu.memory_space<vmem>>, vector<1x32xf32>
    tpu.vector_store %arg14[%208, %c0_60], %207 {strides = array<i32>} : memref<8x32xf32, #tpu.memory_space<vmem>>, vector<1x32xf32>,
    %c8_i32 = arith.constant 8 : i32
    %c0_61 = arith.constant 0 : index
    %c0_62 = arith.constant 0 : index
    %210 = vector.load %arg14[%c0_61, %c0_62] : memref<8x32xf32, #tpu.memory_space<vmem>>, vector<8x32xf32>
    %211 = tpu.iota {dimensions = array<i32: 0>} : vector<8x8xi32>
    %212 = tpu.iota {dimensions = array<i32: 1>} : vector<8x8xi32>
    %213 = arith.addi %211, %212 : vector<8x8xi32>
    %c7_i32_63 = arith.constant 7 : i32
    %214 = vector.broadcast %c7_i32_63 : i32 to vector<8x8xi32>
    %215 = arith.cmpi eq, %213, %214 : vector<8x8xi32>
    %cst_64 = arith.constant 1.000000e+00 : f32
    %cst_65 = arith.constant 0.000000e+00 : f32
    %216 = vector.broadcast %cst_64 : f32 to vector<8x8xf32>
    %217 = vector.broadcast %cst_65 : f32 to vector<8x8xf32>
    %218 = arith.select %215, %216, %217 : vector<8x8xi1>, vector<8x8xf32>
    %219 = vector.extract_strided_slice %210 {offsets = [0, 16], sizes = [8, 16], strides = [1, 1]} : vector<8x32xf32> to vector<8x16xf32>
    %cst_66 = arith.constant dense<0.000000e+00> : vector<8x16xf32>
    %220 = tpu.matmul %218, %219, %cst_66 {dimension_numbers = #tpu.dot_dimension_numbers<[1], [0], [0], [1], [0, 0, 1, 1], [], []>} : vector<8x8xf32>, vector<8x16xf32>, vector<8x16xf32> -> vector<8x16xf32>
    %221 = vector.extract_strided_slice %210 {offsets = [0, 0], sizes = [8, 16], strides = [1, 1]} : vector<8x32xf32> to vector<8x16xf32>
    %c0_67 = arith.constant 0 : index
    %c0_68 = arith.constant 0 : index
    %222 = vector.load %arg6[%c0_67, %c0_68] : memref<32x5xf32, #tpu.memory_space<vmem>>, vector<16x5xf32>
    %cst_69 = arith.constant dense<0.000000e+00> : vector<8x5xf32>
    %223 = tpu.matmul %221, %222, %cst_69 {dimension_numbers = #tpu.dot_dimension_numbers<[1], [0], [0], [1], [0, 0, 1, 1], [], []>} : vector<8x16xf32>, vector<16x5xf32>, vector<8x5xf32> -> vector<8x5xf32>
    %c16 = arith.constant 16 : index
    %c0_70 = arith.constant 0 : index
    %224 = vector.load %arg6[%c16, %c0_70] : memref<32x5xf32, #tpu.memory_space<vmem>>, vector<16x5xf32>
    %cst_71 = arith.constant dense<0.000000e+00> : vector<8x5xf32>
    %225 = tpu.matmul %220, %224, %cst_71 {dimension_numbers = #tpu.dot_dimension_numbers<[1], [0], [0], [1], [0, 0, 1, 1], [], []>} : vector<8x16xf32>, vector<16x5xf32>, vector<8x5xf32> -> vector<8x5xf32>
    %226 = arith.addf %223, %225 : vector<8x5xf32>
    %c0_72 = arith.constant 0 : index
    %c0_73 = arith.constant 0 : index
    %227 = vector.load %arg7[%c0_72, %c0_73] : memref<1x5xf32, #tpu.memory_space<vmem>>, vector<1x5xf32>
    %228 = vector.broadcast %227 : vector<1x5xf32> to vector<8x5xf32>
    %229 = arith.addf %226, %228 : vector<8x5xf32>
    %230 = tpu.iota {dimensions = array<i32: 1>} : vector<1x5xi32>
    %231 = tpu.iota {dimensions = array<i32: 1>} : vector<8x5xi32>
    %232 = tpu.iota {dimensions = array<i32: 0>} : vector<8x5xi32>
    %233 = tpu.iota {dimensions = array<i32: 0>} : vector<8x1xi32>
    %234 = arith.sitofp %231 : vector<8x5xi32> to vector<8x5xf32>
    %c0_74 = arith.constant 0 : index
    %c0_75 = arith.constant 0 : index
    %235 = vector.load %arg8[%c0_74, %c0_75] : memref<8x5xf32, #tpu.memory_space<vmem>>, vector<8x5xf32>
    %c0_76 = arith.constant 0 : index
    %c0_77 = arith.constant 0 : index
    %236 = vector.load %arg9[%c0_76, %c0_77] : memref<8x5xf32, #tpu.memory_space<vmem>>, vector<8x5xf32>
    %237 = arith.cmpi eq, %232, %231 : vector<8x5xi32>
    %238 = vector.extract_strided_slice %229 {offsets = [0, 0], sizes = [1, 5], strides = [1, 1]} : vector<8x5xf32> to vector<1x5xf32>
    %cst_78 = arith.constant 0.000000e+00 : f32
    %239 = vector.shape_cast %238 : vector<1x5xf32> to vector<1x5xf32>
    %240 = vector.broadcast %239 : vector<1x5xf32> to vector<8x5xf32>
    %241 = vector.broadcast %cst_78 : f32 to vector<8x5xf32>
    %242 = arith.select %237, %240, %241 : vector<8x5xi1>, vector<8x5xf32>
    %cst_79 = arith.constant dense<0.000000e+00> : vector<8xf32>
    %243 = vector.multi_reduction <add>, %242, %cst_79 [1] : vector<8x5xf32> to vector<8xf32>
    %244 = vector.shape_cast %243 : vector<8xf32> to vector<8x1xf32>
    %245 = arith.cmpi eq, %232, %231 : vector<8x5xi32>
    %246 = vector.extract_strided_slice %229 {offsets = [2, 0], sizes = [1, 5], strides = [1, 1]} : vector<8x5xf32> to vector<1x5xf32>
    %cst_80 = arith.constant 0.000000e+00 : f32
    %247 = vector.shape_cast %246 : vector<1x5xf32> to vector<1x5xf32>
    %248 = vector.broadcast %247 : vector<1x5xf32> to vector<8x5xf32>
    %249 = vector.broadcast %cst_80 : f32 to vector<8x5xf32>
    %250 = arith.select %245, %248, %249 : vector<8x5xi1>, vector<8x5xf32>
    %cst_81 = arith.constant dense<0.000000e+00> : vector<8xf32>
    %251 = vector.multi_reduction <add>, %250, %cst_81 [1] : vector<8x5xf32> to vector<8xf32>
    %252 = vector.shape_cast %251 : vector<8xf32> to vector<8x1xf32>
    %253 = arith.cmpi eq, %232, %231 : vector<8x5xi32>
    %254 = vector.extract_strided_slice %229 {offsets = [4, 0], sizes = [1, 5], strides = [1, 1]} : vector<8x5xf32> to vector<1x5xf32>
    %cst_82 = arith.constant 0.000000e+00 : f32
    %255 = vector.shape_cast %254 : vector<1x5xf32> to vector<1x5xf32>
    %256 = vector.broadcast %255 : vector<1x5xf32> to vector<8x5xf32>
    %257 = vector.broadcast %cst_82 : f32 to vector<8x5xf32>
    %258 = arith.select %253, %256, %257 : vector<8x5xi1>, vector<8x5xf32>
    %cst_83 = arith.constant dense<0.000000e+00> : vector<8xf32>
    %259 = vector.multi_reduction <add>, %258, %cst_83 [1] : vector<8x5xf32> to vector<8xf32>
    %260 = vector.shape_cast %259 : vector<8xf32> to vector<8x1xf32>
    %261 = arith.cmpi eq, %232, %231 : vector<8x5xi32>
    %262 = vector.extract_strided_slice %229 {offsets = [6, 0], sizes = [1, 5], strides = [1, 1]} : vector<8x5xf32> to vector<1x5xf32>
    %cst_84 = arith.constant 0.000000e+00 : f32
    %263 = vector.shape_cast %262 : vector<1x5xf32> to vector<1x5xf32>
    %264 = vector.broadcast %263 : vector<1x5xf32> to vector<8x5xf32>
    %265 = vector.broadcast %cst_84 : f32 to vector<8x5xf32>
    %266 = arith.select %261, %264, %265 : vector<8x5xi1>, vector<8x5xf32>
    %cst_85 = arith.constant dense<0.000000e+00> : vector<8xf32>
    %267 = vector.multi_reduction <add>, %266, %cst_85 [1] : vector<8x5xf32> to vector<8xf32>
    %268 = vector.shape_cast %267 : vector<8xf32> to vector<8x1xf32>
    %c3_i32_86 = arith.constant 3 : i32
    %269 = vector.broadcast %c3_i32_86 : i32 to vector<1x5xi32>
    %270 = arith.cmpi eq, %230, %269 : vector<1x5xi32>
    %cst_87 = arith.constant 0.000000e+00 : f32
    %cst_88 = arith.constant -1.000000e+04 : f32
    %271 = vector.broadcast %cst_87 : f32 to vector<1x5xf32>
    %272 = vector.broadcast %cst_88 : f32 to vector<1x5xf32>
    %273 = arith.select %270, %271, %272 : vector<1x5xi1>, vector<1x5xf32>
    %274 = vector.broadcast %273 : vector<1x5xf32> to vector<8x5xf32>
    %275 = arith.addf %235, %274 : vector<8x5xf32>
    %cst_89 = arith.constant dense<0xFF800000> : vector<8xf32>
    %276 = vector.multi_reduction <maximumf>, %275, %cst_89 [1] : vector<8x5xf32> to vector<8xf32>
    %277 = vector.shape_cast %276 : vector<8xf32> to vector<8x1xf32>
    %278 = arith.addf %277, %244 : vector<8x1xf32>
    %279 = vector.broadcast %278 : vector<8x1xf32> to vector<8x5xf32>
    %280 = arith.addf %236, %279 : vector<8x5xf32>
    %cst_90 = arith.constant dense<0xFF800000> : vector<5xf32>
    %281 = vector.multi_reduction <maximumf>, %280, %cst_90 [0] : vector<8x5xf32> to vector<5xf32>
    %282 = vector.shape_cast %281 : vector<5xf32> to vector<1x5xf32>
    %283 = vector.broadcast %282 : vector<1x5xf32> to vector<8x5xf32>
    %284 = arith.cmpf oeq, %280, %283 : vector<8x5xf32>
    %c5_i32_91 = arith.constant 5 : i32
    %285 = vector.broadcast %c5_i32_91 : i32 to vector<8x5xi32>
    %286 = arith.select %284, %232, %285 : vector<8x5xi1>, vector<8x5xi32>
    %cst_92 = arith.constant dense<2147483647> : vector<5xi32>
    %287 = vector.multi_reduction <minsi>, %286, %cst_92 [0] : vector<8x5xi32> to vector<5xi32>
    %288 = vector.shape_cast %287 : vector<5xi32> to vector<1x5xi32>
    %289 = vector.extract_strided_slice %229 {offsets = [1, 0], sizes = [1, 5], strides = [1, 1]} : vector<8x5xf32> to vector<1x5xf32>
    %290 = arith.addf %282, %289 : vector<1x5xf32>
    %291 = vector.broadcast %290 : vector<1x5xf32> to vector<8x5xf32>
    %292 = arith.addf %235, %291 : vector<8x5xf32>
    %cst_93 = arith.constant dense<0xFF800000> : vector<8xf32>
    %293 = vector.multi_reduction <maximumf>, %292, %cst_93 [1] : vector<8x5xf32> to vector<8xf32>
    %294 = vector.shape_cast %293 : vector<8xf32> to vector<8x1xf32>
    %295 = vector.broadcast %294 : vector<8x1xf32> to vector<8x5xf32>
    %296 = arith.cmpf oeq, %292, %295 : vector<8x5xf32>
    %cst_94 = arith.constant 5.000000e+00 : f32
    %297 = vector.broadcast %cst_94 : f32 to vector<8x5xf32>
    %298 = arith.select %296, %234, %297 : vector<8x5xi1>, vector<8x5xf32>
    %cst_95 = arith.constant dense<0x7F800000> : vector<8xf32>
    %299 = vector.multi_reduction <minimumf>, %298, %cst_95 [1] : vector<8x5xf32> to vector<8xf32>
    %300 = vector.shape_cast %299 : vector<8xf32> to vector<8x1xf32>
    %301 = arith.fptosi %300 : vector<8x1xf32> to vector<8x1xi32>
    %302 = arith.addf %294, %252 : vector<8x1xf32>
    %303 = vector.broadcast %302 : vector<8x1xf32> to vector<8x5xf32>
    %304 = arith.addf %236, %303 : vector<8x5xf32>
    %cst_96 = arith.constant dense<0xFF800000> : vector<5xf32>
    %305 = vector.multi_reduction <maximumf>, %304, %cst_96 [0] : vector<8x5xf32> to vector<5xf32>
    %306 = vector.shape_cast %305 : vector<5xf32> to vector<1x5xf32>
    %307 = vector.broadcast %306 : vector<1x5xf32> to vector<8x5xf32>
    %308 = arith.cmpf oeq, %304, %307 : vector<8x5xf32>
    %c5_i32_97 = arith.constant 5 : i32
    %309 = vector.broadcast %c5_i32_97 : i32 to vector<8x5xi32>
    %310 = arith.select %308, %232, %309 : vector<8x5xi1>, vector<8x5xi32>
    %cst_98 = arith.constant dense<2147483647> : vector<5xi32>
    %311 = vector.multi_reduction <minsi>, %310, %cst_98 [0] : vector<8x5xi32> to vector<5xi32>
    %312 = vector.shape_cast %311 : vector<5xi32> to vector<1x5xi32>
    %313 = vector.extract_strided_slice %229 {offsets = [3, 0], sizes = [1, 5], strides = [1, 1]} : vector<8x5xf32> to vector<1x5xf32>
    %314 = arith.addf %306, %313 : vector<1x5xf32>
    %315 = vector.broadcast %314 : vector<1x5xf32> to vector<8x5xf32>
    %316 = arith.addf %235, %315 : vector<8x5xf32>
    %cst_99 = arith.constant dense<0xFF800000> : vector<8xf32>
    %317 = vector.multi_reduction <maximumf>, %316, %cst_99 [1] : vector<8x5xf32> to vector<8xf32>
    %318 = vector.shape_cast %317 : vector<8xf32> to vector<8x1xf32>
    %319 = vector.broadcast %318 : vector<8x1xf32> to vector<8x5xf32>
    %320 = arith.cmpf oeq, %316, %319 : vector<8x5xf32>
    %cst_100 = arith.constant 5.000000e+00 : f32
    %321 = vector.broadcast %cst_100 : f32 to vector<8x5xf32>
    %322 = arith.select %320, %234, %321 : vector<8x5xi1>, vector<8x5xf32>
    %cst_101 = arith.constant dense<0x7F800000> : vector<8xf32>
    %323 = vector.multi_reduction <minimumf>, %322, %cst_101 [1] : vector<8x5xf32> to vector<8xf32>
    %324 = vector.shape_cast %323 : vector<8xf32> to vector<8x1xf32>
    %325 = arith.fptosi %324 : vector<8x1xf32> to vector<8x1xi32>
    %326 = arith.addf %318, %260 : vector<8x1xf32>
    %327 = vector.broadcast %326 : vector<8x1xf32> to vector<8x5xf32>
    %328 = arith.addf %236, %327 : vector<8x5xf32>
    %cst_102 = arith.constant dense<0xFF800000> : vector<5xf32>
    %329 = vector.multi_reduction <maximumf>, %328, %cst_102 [0] : vector<8x5xf32> to vector<5xf32>
    %330 = vector.shape_cast %329 : vector<5xf32> to vector<1x5xf32>
    %331 = vector.broadcast %330 : vector<1x5xf32> to vector<8x5xf32>
    %332 = arith.cmpf oeq, %328, %331 : vector<8x5xf32>
    %c5_i32_103 = arith.constant 5 : i32
    %333 = vector.broadcast %c5_i32_103 : i32 to vector<8x5xi32>
    %334 = arith.select %332, %232, %333 : vector<8x5xi1>, vector<8x5xi32>
    %cst_104 = arith.constant dense<2147483647> : vector<5xi32>
    %335 = vector.multi_reduction <minsi>, %334, %cst_104 [0] : vector<8x5xi32> to vector<5xi32>
    %336 = vector.shape_cast %335 : vector<5xi32> to vector<1x5xi32>
    %337 = vector.extract_strided_slice %229 {offsets = [5, 0], sizes = [1, 5], strides = [1, 1]} : vector<8x5xf32> to vector<1x5xf32>
    %338 = arith.addf %330, %337 : vector<1x5xf32>
    %339 = vector.broadcast %338 : vector<1x5xf32> to vector<8x5xf32>
    %340 = arith.addf %235, %339 : vector<8x5xf32>
    %cst_105 = arith.constant dense<0xFF800000> : vector<8xf32>
    %341 = vector.multi_reduction <maximumf>, %340, %cst_105 [1] : vector<8x5xf32> to vector<8xf32>
    %342 = vector.shape_cast %341 : vector<8xf32> to vector<8x1xf32>
    %343 = vector.broadcast %342 : vector<8x1xf32> to vector<8x5xf32>
    %344 = arith.cmpf oeq, %340, %343 : vector<8x5xf32>
    %cst_106 = arith.constant 5.000000e+00 : f32
    %345 = vector.broadcast %cst_106 : f32 to vector<8x5xf32>
    %346 = arith.select %344, %234, %345 : vector<8x5xi1>, vector<8x5xf32>
    %cst_107 = arith.constant dense<0x7F800000> : vector<8xf32>
    %347 = vector.multi_reduction <minimumf>, %346, %cst_107 [1] : vector<8x5xf32> to vector<8xf32>
    %348 = vector.shape_cast %347 : vector<8xf32> to vector<8x1xf32>
    %349 = arith.fptosi %348 : vector<8x1xf32> to vector<8x1xi32>
    %350 = arith.addf %342, %268 : vector<8x1xf32>
    %351 = vector.broadcast %350 : vector<8x1xf32> to vector<8x5xf32>
    %352 = arith.addf %236, %351 : vector<8x5xf32>
    %cst_108 = arith.constant dense<0xFF800000> : vector<5xf32>
    %353 = vector.multi_reduction <maximumf>, %352, %cst_108 [0] : vector<8x5xf32> to vector<5xf32>
    %354 = vector.shape_cast %353 : vector<5xf32> to vector<1x5xf32>
    %355 = vector.broadcast %354 : vector<1x5xf32> to vector<8x5xf32>
    %356 = arith.cmpf oeq, %352, %355 : vector<8x5xf32>
    %c5_i32_109 = arith.constant 5 : i32
    %357 = vector.broadcast %c5_i32_109 : i32 to vector<8x5xi32>
    %358 = arith.select %356, %232, %357 : vector<8x5xi1>, vector<8x5xi32>
    %cst_110 = arith.constant dense<2147483647> : vector<5xi32>
    %359 = vector.multi_reduction <minsi>, %358, %cst_110 [0] : vector<8x5xi32> to vector<5xi32>
    %360 = vector.shape_cast %359 : vector<5xi32> to vector<1x5xi32>
    %361 = vector.extract_strided_slice %229 {offsets = [7, 0], sizes = [1, 5], strides = [1, 1]} : vector<8x5xf32> to vector<1x5xf32>
    %362 = arith.addf %354, %361 : vector<1x5xf32>
    %c0_111 = arith.constant 0 : index
    %c0_112 = arith.constant 0 : index
    %363 = vector.load %arg10[%c0_111, %c0_112] : memref<1x5xf32, #tpu.memory_space<vmem>>, vector<1x5xf32>
    %364 = arith.addf %362, %363 : vector<1x5xf32>
    %365 = vector.shape_cast %364 : vector<1x5xf32> to vector<1x1x5xf32>
    %cst_113 = arith.constant dense<0xFF800000> : vector<1xf32>
    %366 = vector.multi_reduction <maximumf>, %365, %cst_113 [1, 2] : vector<1x1x5xf32> to vector<1xf32>
    %367 = vector.shape_cast %366 : vector<1xf32> to vector<1x1x1xf32>
    %368 = vector.extract %367[0, 0, 0] : f32 from vector<1x1x1xf32>
    %369 = vector.broadcast %368 : f32 to vector<1x5xf32>
    %370 = arith.cmpf oeq, %364, %369 : vector<1x5xf32>
    %c5_i32_114 = arith.constant 5 : i32
    %371 = vector.broadcast %c5_i32_114 : i32 to vector<1x5xi32>
    %372 = arith.select %370, %230, %371 : vector<1x5xi1>, vector<1x5xi32>
    %373 = vector.shape_cast %372 : vector<1x5xi32> to vector<1x1x5xi32>
    %cst_115 = arith.constant dense<2147483647> : vector<1xi32>
    %374 = vector.multi_reduction <minsi>, %373, %cst_115 [1, 2] : vector<1x1x5xi32> to vector<1xi32>
    %375 = vector.shape_cast %374 : vector<1xi32> to vector<1x1x1xi32>
    %376 = vector.extract %375[0, 0, 0] : i32 from vector<1x1x1xi32>
    %377 = vector.broadcast %368 : f32 to vector<1x1xf32>
    %c0_116 = arith.constant 0 : index
    %c0_117 = arith.constant 0 : index
    %378 = vector.load %arg11[%c0_116, %c0_117] : memref<1x1xf32, #tpu.memory_space<vmem>>, vector<1x1xf32>
    tpu.vector_store %arg11[%c0_116, %c0_117], %377 {strides = array<i32>} : memref<1x1xf32, #tpu.memory_space<vmem>>, vector<1x1xf32>,
    %379 = vector.broadcast %376 : i32 to vector<1x1xi32>
    %c0_118 = arith.constant 0 : index
    %c7 = arith.constant 7 : index
    %380 = vector.load %arg12[%c0_118, %c7] : memref<1x8xi32, #tpu.memory_space<vmem>>, vector<1x1xi32>
    tpu.vector_store %arg12[%c0_118, %c7], %379 {strides = array<i32>} : memref<1x8xi32, #tpu.memory_space<vmem>>, vector<1x1xi32>,
    %381 = vector.broadcast %376 : i32 to vector<1x5xi32>
    %382 = arith.cmpi eq, %230, %381 : vector<1x5xi32>
    %c0_i32_119 = arith.constant 0 : i32
    %383 = vector.broadcast %c0_i32_119 : i32 to vector<1x5xi32>
    %384 = arith.select %382, %360, %383 : vector<1x5xi1>, vector<1x5xi32>
    %385 = vector.shape_cast %384 : vector<1x5xi32> to vector<1x1x5xi32>
    %cst_120 = arith.constant dense<0> : vector<1xi32>
    %386 = vector.multi_reduction <add>, %385, %cst_120 [1, 2] : vector<1x1x5xi32> to vector<1xi32>
    %387 = vector.shape_cast %386 : vector<1xi32> to vector<1x1x1xi32>
    %388 = vector.extract %387[0, 0, 0] : i32 from vector<1x1x1xi32>
    %389 = vector.broadcast %388 : i32 to vector<1x1xi32>
    %c0_121 = arith.constant 0 : index
    %c6 = arith.constant 6 : index
    %390 = vector.load %arg12[%c0_121, %c6] : memref<1x8xi32, #tpu.memory_space<vmem>>, vector<1x1xi32>
    tpu.vector_store %arg12[%c0_121, %c6], %389 {strides = array<i32>} : memref<1x8xi32, #tpu.memory_space<vmem>>, vector<1x1xi32>,
    %391 = vector.broadcast %388 : i32 to vector<8x1xi32>
    %392 = arith.cmpi eq, %233, %391 : vector<8x1xi32>
    %c0_i32_122 = arith.constant 0 : i32
    %393 = vector.broadcast %c0_i32_122 : i32 to vector<8x1xi32>
    %394 = arith.select %392, %349, %393 : vector<8x1xi1>, vector<8x1xi32>
    %395 = vector.shape_cast %394 : vector<8x1xi32> to vector<1x8x1xi32>
    %cst_123 = arith.constant dense<0> : vector<1xi32>
    %396 = vector.multi_reduction <add>, %395, %cst_123 [1, 2] : vector<1x8x1xi32> to vector<1xi32>
    %397 = vector.shape_cast %396 : vector<1xi32> to vector<1x1x1xi32>
    %398 = vector.extract %397[0, 0, 0] : i32 from vector<1x1x1xi32>
    %399 = vector.broadcast %398 : i32 to vector<1x1xi32>
    %c0_124 = arith.constant 0 : index
    %c5 = arith.constant 5 : index
    %400 = vector.load %arg12[%c0_124, %c5] : memref<1x8xi32, #tpu.memory_space<vmem>>, vector<1x1xi32>
    tpu.vector_store %arg12[%c0_124, %c5], %399 {strides = array<i32>} : memref<1x8xi32, #tpu.memory_space<vmem>>, vector<1x1xi32>,
    %401 = vector.broadcast %398 : i32 to vector<1x5xi32>
    %402 = arith.cmpi eq, %230, %401 : vector<1x5xi32>
    %c0_i32_125 = arith.constant 0 : i32
    %403 = vector.broadcast %c0_i32_125 : i32 to vector<1x5xi32>
    %404 = arith.select %402, %336, %403 : vector<1x5xi1>, vector<1x5xi32>
    %405 = vector.shape_cast %404 : vector<1x5xi32> to vector<1x1x5xi32>
    %cst_126 = arith.constant dense<0> : vector<1xi32>
    %406 = vector.multi_reduction <add>, %405, %cst_126 [1, 2] : vector<1x1x5xi32> to vector<1xi32>
    %407 = vector.shape_cast %406 : vector<1xi32> to vector<1x1x1xi32>
    %408 = vector.extract %407[0, 0, 0] : i32 from vector<1x1x1xi32>
    %409 = vector.broadcast %408 : i32 to vector<1x1xi32>
    %c0_127 = arith.constant 0 : index
    %c4 = arith.constant 4 : index
    %410 = vector.load %arg12[%c0_127, %c4] : memref<1x8xi32, #tpu.memory_space<vmem>>, vector<1x1xi32>
    tpu.vector_store %arg12[%c0_127, %c4], %409 {strides = array<i32>} : memref<1x8xi32, #tpu.memory_space<vmem>>, vector<1x1xi32>,
    %411 = vector.broadcast %408 : i32 to vector<8x1xi32>
    %412 = arith.cmpi eq, %233, %411 : vector<8x1xi32>
    %c0_i32_128 = arith.constant 0 : i32
    %413 = vector.broadcast %c0_i32_128 : i32 to vector<8x1xi32>
    %414 = arith.select %412, %325, %413 : vector<8x1xi1>, vector<8x1xi32>
    %415 = vector.shape_cast %414 : vector<8x1xi32> to vector<1x8x1xi32>
    %cst_129 = arith.constant dense<0> : vector<1xi32>
    %416 = vector.multi_reduction <add>, %415, %cst_129 [1, 2] : vector<1x8x1xi32> to vector<1xi32>
    %417 = vector.shape_cast %416 : vector<1xi32> to vector<1x1x1xi32>
    %418 = vector.extract %417[0, 0, 0] : i32 from vector<1x1x1xi32>
    %419 = vector.broadcast %418 : i32 to vector<1x1xi32>
    %c0_130 = arith.constant 0 : index
    %c3 = arith.constant 3 : index
    %420 = vector.load %arg12[%c0_130, %c3] : memref<1x8xi32, #tpu.memory_space<vmem>>, vector<1x1xi32>
    tpu.vector_store %arg12[%c0_130, %c3], %419 {strides = array<i32>} : memref<1x8xi32, #tpu.memory_space<vmem>>, vector<1x1xi32>,
    %421 = vector.broadcast %418 : i32 to vector<1x5xi32>
    %422 = arith.cmpi eq, %230, %421 : vector<1x5xi32>
    %c0_i32_131 = arith.constant 0 : i32
    %423 = vector.broadcast %c0_i32_131 : i32 to vector<1x5xi32>
    %424 = arith.select %422, %312, %423 : vector<1x5xi1>, vector<1x5xi32>
    %425 = vector.shape_cast %424 : vector<1x5xi32> to vector<1x1x5xi32>
    %cst_132 = arith.constant dense<0> : vector<1xi32>
    %426 = vector.multi_reduction <add>, %425, %cst_132 [1, 2] : vector<1x1x5xi32> to vector<1xi32>
    %427 = vector.shape_cast %426 : vector<1xi32> to vector<1x1x1xi32>
    %428 = vector.extract %427[0, 0, 0] : i32 from vector<1x1x1xi32>
    %429 = vector.broadcast %428 : i32 to vector<1x1xi32>
    %c0_133 = arith.constant 0 : index
    %c2 = arith.constant 2 : index
    %430 = vector.load %arg12[%c0_133, %c2] : memref<1x8xi32, #tpu.memory_space<vmem>>, vector<1x1xi32>
    tpu.vector_store %arg12[%c0_133, %c2], %429 {strides = array<i32>} : memref<1x8xi32, #tpu.memory_space<vmem>>, vector<1x1xi32>,
    %431 = vector.broadcast %428 : i32 to vector<8x1xi32>
    %432 = arith.cmpi eq, %233, %431 : vector<8x1xi32>
    %c0_i32_134 = arith.constant 0 : i32
    %433 = vector.broadcast %c0_i32_134 : i32 to vector<8x1xi32>
    %434 = arith.select %432, %301, %433 : vector<8x1xi1>, vector<8x1xi32>
    %435 = vector.shape_cast %434 : vector<8x1xi32> to vector<1x8x1xi32>
    %cst_135 = arith.constant dense<0> : vector<1xi32>
    %436 = vector.multi_reduction <add>, %435, %cst_135 [1, 2] : vector<1x8x1xi32> to vector<1xi32>
    %437 = vector.shape_cast %436 : vector<1xi32> to vector<1x1x1xi32>
    %438 = vector.extract %437[0, 0, 0] : i32 from vector<1x1x1xi32>
    %439 = vector.broadcast %438 : i32 to vector<1x1xi32>
    %c0_136 = arith.constant 0 : index
    %c1 = arith.constant 1 : index
    %440 = vector.load %arg12[%c0_136, %c1] : memref<1x8xi32, #tpu.memory_space<vmem>>, vector<1x1xi32>
    tpu.vector_store %arg12[%c0_136, %c1], %439 {strides = array<i32>} : memref<1x8xi32, #tpu.memory_space<vmem>>, vector<1x1xi32>,
    %441 = vector.broadcast %438 : i32 to vector<1x5xi32>
    %442 = arith.cmpi eq, %230, %441 : vector<1x5xi32>
    %c0_i32_137 = arith.constant 0 : i32
    %443 = vector.broadcast %c0_i32_137 : i32 to vector<1x5xi32>
    %444 = arith.select %442, %288, %443 : vector<1x5xi1>, vector<1x5xi32>
    %445 = vector.shape_cast %444 : vector<1x5xi32> to vector<1x1x5xi32>
    %cst_138 = arith.constant dense<0> : vector<1xi32>
    %446 = vector.multi_reduction <add>, %445, %cst_138 [1, 2] : vector<1x1x5xi32> to vector<1xi32>
    %447 = vector.shape_cast %446 : vector<1xi32> to vector<1x1x1xi32>
    %448 = vector.extract %447[0, 0, 0] : i32 from vector<1x1x1xi32>
    %449 = vector.broadcast %448 : i32 to vector<1x1xi32>
    %c0_139 = arith.constant 0 : index
    %c0_140 = arith.constant 0 : index
    %450 = vector.load %arg12[%c0_139, %c0_140] : memref<1x8xi32, #tpu.memory_space<vmem>>, vector<1x1xi32>
    tpu.vector_store %arg12[%c0_139, %c0_140], %449 {strides = array<i32>} : memref<1x8xi32, #tpu.memory_space<vmem>>, vector<1x1xi32>,
    return
  }
}

</mosaic_0001>

<bundles_post_ra>
// kernel: bilstm_crf_forward.1
= control target key start
LH: loop header
LB: loop body
LE: loop exit
PB: predicated region body
PF: predicated region fallthrough
CT: control target
= control target key end

     0   :  { %18 = vsyncpa [#allocation5], 0  ;;  %v1704_v1 = vmov 0.0   ;;  %vm1705_vm0 = vmmov 0   ;;  %s2143_s0 = inlined_call_operand.vmem [shape: bf16[8,64], index: 0, kind: input, shape index: {}]   ;;  %s2144_s1 = inlined_call_operand.vmem [shape: bf16[64,128], index: 1, kind: input, shape index: {}]   ;;  %s2145_s2 = inlined_call_operand.vmem [shape: f32[1,128], index: 2, kind: input, shape index: {}]   ;;  %s2146_s3 = inlined_call_operand.vmem [shape: bf16[32,128], index: 3, kind: input, shape index: {}]   ;;  %s2147_s4 = inlined_call_operand.vmem [shape: f32[1,32], index: 4, kind: input, shape index: {}]   ;;  %s2148_s5 = inlined_call_operand.vmem [shape: f32[1,32], index: 5, kind: input, shape index: {}]   ;;  %s2149_s6 = inlined_call_operand.vmem [shape: f32[32,5], index: 6, kind: input, shape index: {}]   ;;  %s2150_s7 = inlined_call_operand.vmem [shape: f32[1,5], index: 7, kind: input, shape index: {}]   ;;  %s2151_s8 = inlined_call_operand.vmem [shape: f32[8,5], index: 8, kind: input, shape index: {}]   ;;  %s2152_s9 = inlined_call_operand.vmem [shape: f32[8,5], index: 9, kind: input, shape index: {}]   ;;  %s2153_s10 = inlined_call_operand.vmem [shape: f32[1,5], index: 10, kind: input, shape index: {}]   ;;  %s2154_s11 = inlined_call_operand.hbm [shape: f32[1,1], index: 11, kind: output, shape index: {0}]   ;;  %s2155_s12 = inlined_call_operand.hbm [shape: s32[1,8], index: 12, kind: output, shape index: {1}]  }
   0x1   :  { %v1602_v0 = vld [vmem:[%s2144_s1] sm:$0xff]   ;;  %1468 = vmatprep.subr.bf16.mxu0 %v1704_v1  ;;  %1480 = vmatprep.subr.bf16.mxu1 %v1704_v1  ;;  %v1603_v2 = vld [vmem:[%s2144_s1 + $0x8] sm:$0xff]   ;;  %v1604_v4 = vld [vmem:[%s2144_s1 + $0x10] sm:$0xff]  }
   0x2   :  { %1469 = vmatpush3.bf16.msra.mxu0 %v1602_v0  ;;  %1476 = vmatprep.mubr.msk.bf16.mxu0 %vm1705_vm0, %v1704_v1  ;;  %v1794_v3 = vld [vmem:[%s2146_s3] sm:$0xff]   ;;  %v1804_v5 = vld [vmem:[%s2146_s3 + $0x8] sm:$0xff]  }
   0x3   :  { %1470 = vmatprep.subr.bf16.mxu0 %v1704_v1  ;;  %1484 = vmatprep.mubr.msk.bf16.mxu1 %vm1705_vm0, %v1704_v1  ;;  %v132_v6 = vld [vmem:[%s2147_s4] sm:$0x1] }
   0x4   :  { %1481 = vmatpush3.bf16.msra.mxu1 %v1794_v3 }
   0x6   :  { %1471 = vmatpush3.bf16.msra.mxu0 %v1603_v2 }
   0x7   :  { %1472 = vmatprep.subr.bf16.mxu0 %v1704_v1 }
   0x8   :  { %19 = vsyncpa [#allocation7], 0  ;;  %1482 = vmatprep.subr.bf16.mxu1 %v1704_v1  ;;  %v1605_v7 = vld [vmem:[%s2144_s1 + $0x18] sm:$0xff]   ;;  %v135_v8 = vpack.c.bf16 %v132_v6, %v132_v6  ;;  %vm148_vm1 = vcmask 261120   ;;  %v43_v9 = vld [vmem:[%s2143_s0] sm:$0xf] }
   0x9   :  { %1483 = vmatpush3.bf16.msra.mxu1 %v1804_v5  ;;  %vm83_vm2 = vcmask 523264   ;;  %v1393_v11 = vld [vmem:[%s2145_s2] ss:$0 sm:$0xff]  ;;  %s1706_s2 = smov 64   ;;  %s1707_s19 = smov 32   ;;  %vm230_vm3 = vcmask 253952  }
   0xa   :  { %1473 = vmatpush3.bf16.msra.mxu0 %v1604_v4  ;;  %1488 = vmatprep.subr.bf16.mxu1 %v1704_v1  ;;  %v1404_v28 = vld [vmem:[%s2148_s5] ss:$0 sm:$0xff]  ;;  %s1709_s23 = smov 112   ;;  %vm797_vm5 = vcmask 64512   ;;  %vm875_vm6 = vcmask 130048   ;;  %vm1038_vm8 = vcmask 39936  }
   0xb   :  { %1474 = vmatprep.subr.bf16.mxu0 %v1704_v1  ;;  %vm1210_vm14 = vcmask 39943   ;;  %vm1249_vm15 = vcmask 0  }
   0xc   :  { %1485 = vmatmul.mubr.msk.bf16.vlgmr.msra.gmra.mrb[0].mxu1 %vm148_vm1, %v135_v8 }
   0xd   :  { %1489 = vmatpush3.bf16.msra.mxu1 %v1794_v3  ;;  %1492 = vmatprep.mubr.msk.bf16.mxu1 %vm1705_vm0, %v1704_v1 }
   0xe   :  { %1475 = vmatpush3.bf16.msra.mxu0 %v1605_v7  ;;  %1490 = vmatprep.subr.bf16.mxu1 %v1704_v1 }
   0xf   :  { %1496 = vmatprep.subr.bf16.mxu0 %v1704_v1 }
  0x11   :  { %1477 = vmatmul.mubr.msk.bf16.vlgmr.msra.gmra.mrb[0].mxu0 %vm83_vm2, %v43_v9  ;;  %1491 = vmatpush3.bf16.msra.mxu1 %v1804_v5 }
  0x12   :  { %1497 = vmatpush3.bf16.msra.mxu0 %v1794_v3  ;;  %1500 = vmatprep.mubr.msk.bf16.mxu0 %vm1705_vm0, %v1704_v1 }
  0x13   :  { %1498 = vmatprep.subr.bf16.mxu0 %v1704_v1  ;;  %1504 = vmatprep.subr.bf16.mxu1 %v1704_v1 }
  0x16   :  { %1499 = vmatpush3.bf16.msra.mxu0 %v1804_v5 }
  0x17   :  { %1512 = vmatprep.subr.bf16.mxu0 %v1704_v1 }
  0xdf   :  { %v186_v10 = vpop.f32.mrb[0].mxu1 }
  0xe0   :  { %v1486_v12 = vpop.f32.mrb[1].mxu1 }
  0xe1   :  { %v189_v13 = vpop.f32.mrb[2].mxu1 }
  0xe2   :  { %v1487_v15 = vpop.f32.mrb[3].mxu1 }
  0xe4   :  { %v121_v14 = vpop.f32.mrb[0].mxu0 }
  0xe5   :  { %v122_v16 = vadd.f32 %v1393_v11, %v121_v14  ;;  %v1478_v17 = vpop.f32.mrb[1].mxu0 }
  0xe6   :  { %v124_v18 = vpop.f32.mrb[2].mxu0 }
  0xe7   :  { %127 = vst [vmem:[#allocation2] sm:$0xff] %v122_v16  ;;  %v1479_v19 = vpop.f32.mrb[3].mxu0 }
  0xee   :  { %v134_v20 = vld [vmem:[#allocation2] sm:$0x1]  ;;  %v232_v40 = vld [vmem:[#allocation2 + $0x1] sm:$0x1]  ;;  %v311_v62 = vld [vmem:[#allocation2 + $0x2] sm:$0x1] }
  0xef   :  { %v192_v21 = vadd.f32 %v186_v10, %v134_v20 }
  0xf1   :  { %v1402_v22 = vmul.f32 -1.442695, %v192_v21 }
  0xf3   :  { %1608 = vpow2.f32 %v1402_v22 }
  0xfd   :  { %v1609_v23 = vpop.eup %1608 }
  0xfe   :  { %v196_v24 = vadd.f32 1.0, %v1609_v23  ;;  %v390_v23 = vld [vmem:[#allocation2 + $0x3] sm:$0x1] }
 0x100   :  { %1610 = vrcp.f32 %v196_v24 }
 0x10a   :  { %v1611_v25 = vpop.eup %1610 }
 0x10b   :  { %v199_v26 = vmul.f32 2.0, %v1611_v25 }
 0x10d   :  { %v1403_v27 = vadd.f32 -1.0, %v199_v26 }
 0x10f   :  { %211 = vrot.lane.b32.xlu0 %v1403_v27, %s1706_s2 }
 0x113   :  { %206 = vrot.lane.b32.xlu0 %v1404_v28, %s1707_s19 }
 0x181   :  { %v212_v29 = vpop.permute.xlu0 %211 }
 0x182   :  { %v214_v30 = vmul.f32 %v1611_v25, %v212_v29 }
 0x184   :  { %216 = vrot.lane.b32.xlu1 %v214_v30, %s1707_s19 }
 0x185   :  { %v207_v31 = vpop.permute.xlu0 %206 }
 0x186   :  { %v209_v32 = vmul.f32 %v1611_v25, %v207_v31 }
 0x1f6   :  { %v217_v33 = vpop.permute.xlu1 %216 }
 0x1f7   :  { %v219_v34 = vadd.f32 %v217_v33, %v209_v32 }
 0x1f9   :  { %1612 = vtanh.f32 %v219_v34 }
 0x203   :  { %v1613_v35 = vpop.eup %1612 }
 0x204   :  { %222 = vrot.lane.b32.xlu1 %v1613_v35, %s1706_s2 }
 0x276   :  { %v223_v36 = vpop.permute.xlu1 %222 }
 0x277   :  { %v1843_v37 = vmul.f32 %v1611_v25, %v223_v36 }
 0x279   :  { %v233_v38 = vpack.c.bf16 %v1843_v37, %v1843_v37 }
 0x27b   :  { %235 = vrot.lane.b32.xlu0 %v233_v38, %s1707_s19 }
 0x2ed   :  { %v236_v39 = vpop.permute.xlu0 %235 }
 0x2ee   :  { %1493 = vmatmul.mubr.msk.bf16.vlgmr.msra.gmra.mrb[4].mxu1 %vm148_vm1, %v236_v39 }
 0x2ef   :  { %1505 = vmatpush3.bf16.msra.mxu1 %v1794_v3  ;;  %1508 = vmatprep.mubr.msk.bf16.mxu1 %vm1705_vm0, %v1704_v1 }
 0x2f0   :  { %1506 = vmatprep.subr.bf16.mxu1 %v1704_v1 }
 0x2f3   :  { %1507 = vmatpush3.bf16.msra.mxu1 %v1804_v5 }
 0x2f4   :  { %1520 = vmatprep.subr.bf16.mxu1 %v1704_v1 }
 0x3c1   :  { %v274_v41 = vpop.f32.mrb[4].mxu1 }
 0x3c2   :  { %v280_v42 = vadd.f32 %v274_v41, %v232_v40  ;;  %v1494_v43 = vpop.f32.mrb[5].mxu1 }
 0x3c3   :  { %v277_v44 = vpop.f32.mrb[6].mxu1 }
 0x3c4   :  { %v1406_v45 = vmul.f32 -1.442695, %v280_v42  ;;  %v1495_v46 = vpop.f32.mrb[7].mxu1 }
 0x3c5   :  { %v469_v46 = vld [vmem:[#allocation2 + $0x4] sm:$0x1] }
 0x3c6   :  { %1614 = vpow2.f32 %v1406_v45 }
 0x3d0   :  { %v1615_v47 = vpop.eup %1614 }
 0x3d1   :  { %v284_v48 = vadd.f32 1.0, %v1615_v47 }
 0x3d3   :  { %1616 = vrcp.f32 %v284_v48 }
 0x3dd   :  { %v1617_v49 = vpop.eup %1616 }
 0x3de   :  { %v287_v50 = vmul.f32 2.0, %v1617_v49  ;;  %v289_v54 = vmul.f32 %v1617_v49, %v219_v34 }
 0x3e0   :  { %v1407_v51 = vadd.f32 -1.0, %v287_v50 }
 0x3e2   :  { %291 = vrot.lane.b32.xlu1 %v1407_v51, %s1706_s2 }
 0x454   :  { %v292_v52 = vpop.permute.xlu1 %291 }
 0x455   :  { %v294_v53 = vmul.f32 %v1617_v49, %v292_v52 }
 0x457   :  { %296 = vrot.lane.b32.xlu0 %v294_v53, %s1707_s19 }
 0x4c9   :  { %v297_v55 = vpop.permute.xlu0 %296 }
 0x4ca   :  { %v299_v56 = vadd.f32 %v297_v55, %v289_v54 }
 0x4cc   :  { %1618 = vtanh.f32 %v299_v56 }
 0x4d6   :  { %v1619_v57 = vpop.eup %1618 }
 0x4d7   :  { %302 = vrot.lane.b32.xlu1 %v1619_v57, %s1706_s2 }
 0x549   :  { %v303_v58 = vpop.permute.xlu1 %302 }
 0x54a   :  { %v1858_v59 = vmul.f32 %v1617_v49, %v303_v58 }
 0x54c   :  { %v312_v60 = vpack.c.bf16 %v1858_v59, %v1858_v59 }
 0x54e   :  { %314 = vrot.lane.b32.xlu0 %v312_v60, %s1707_s19 }
 0x5c0   :  { %v315_v61 = vpop.permute.xlu0 %314 }
 0x5c1   :  { %1501 = vmatmul.mubr.msk.bf16.vlgmr.msra.gmra.mrb[4].mxu0 %vm148_vm1, %v315_v61 }
 0x5c2   :  { %1513 = vmatpush3.bf16.msra.mxu0 %v1794_v3  ;;  %1516 = vmatprep.mubr.msk.bf16.mxu0 %vm1705_vm0, %v1704_v1 }
 0x5c3   :  { %1514 = vmatprep.subr.bf16.mxu0 %v1704_v1 }
 0x5c6   :  { %1515 = vmatpush3.bf16.msra.mxu0 %v1804_v5 }
 0x5c7   :  { %1528 = vmatprep.subr.bf16.mxu0 %v1704_v1 }
 0x694   :  { %v353_v63 = vpop.f32.mrb[4].mxu0 }
 0x695   :  { %v359_v0 = vadd.f32 %v353_v63, %v311_v62  ;;  %v1502_v2 = vpop.f32.mrb[5].mxu0 }
 0x696   :  { %v356_v4 = vpop.f32.mrb[6].mxu0 }
 0x697   :  { %v1409_v6 = vmul.f32 -1.442695, %v359_v0  ;;  %v1503_v7 = vpop.f32.mrb[7].mxu0 }
 0x699   :  { %1620 = vpow2.f32 %v1409_v6 }
 0x6a3   :  { %v1621_v8 = vpop.eup %1620 }
 0x6a4   :  { %v363_v9 = vadd.f32 1.0, %v1621_v8  ;;  %v548_v8 = vld [vmem:[#allocation2 + $0x5] sm:$0x1] }
 0x6a6   :  { %1622 = vrcp.f32 %v363_v9 }
 0x6b0   :  { %v1623_v10 = vpop.eup %1622 }
 0x6b1   :  { %v366_v11 = vmul.f32 2.0, %v1623_v10  ;;  %v368_v15 = vmul.f32 %v1623_v10, %v299_v56 }
 0x6b3   :  { %v1410_v12 = vadd.f32 -1.0, %v366_v11 }
 0x6b5   :  { %370 = vrot.lane.b32.xlu1 %v1410_v12, %s1706_s2 }
 0x727   :  { %v371_v13 = vpop.permute.xlu1 %370 }
 0x728   :  { %v373_v14 = vmul.f32 %v1623_v10, %v371_v13 }
 0x72a   :  { %375 = vrot.lane.b32.xlu0 %v373_v14, %s1707_s19 }
 0x79c   :  { %v376_v16 = vpop.permute.xlu0 %375 }
 0x79d   :  { %v378_v17 = vadd.f32 %v376_v16, %v368_v15 }
 0x79f   :  { %1624 = vtanh.f32 %v378_v17 }
 0x7a9   :  { %v1625_v18 = vpop.eup %1624 }
 0x7aa   :  { %381 = vrot.lane.b32.xlu1 %v1625_v18, %s1706_s2 }
 0x81c   :  { %v382_v19 = vpop.permute.xlu1 %381 }
 0x81d   :  { %v1873_v20 = vmul.f32 %v1623_v10, %v382_v19 }
 0x81f   :  { %v391_v21 = vpack.c.bf16 %v1873_v20, %v1873_v20 }
 0x821   :  { %393 = vrot.lane.b32.xlu0 %v391_v21, %s1707_s19 }
 0x893   :  { %v394_v22 = vpop.permute.xlu0 %393 }
 0x894   :  { %1509 = vmatmul.mubr.msk.bf16.vlgmr.msra.gmra.mrb[8].mxu1 %vm148_vm1, %v394_v22 }
 0x895   :  { %1521 = vmatpush3.bf16.msra.mxu1 %v1794_v3  ;;  %1524 = vmatprep.mubr.msk.bf16.mxu1 %vm1705_vm0, %v1704_v1 }
 0x896   :  { %1522 = vmatprep.subr.bf16.mxu1 %v1704_v1 }
 0x899   :  { %1523 = vmatpush3.bf16.msra.mxu1 %v1804_v5 }
 0x89a   :  { %1536 = vmatprep.subr.bf16.mxu1 %v1704_v1 }
 0x967   :  { %v432_v24 = vpop.f32.mrb[8].mxu1 }
 0x968   :  { %v438_v25 = vadd.f32 %v432_v24, %v390_v23  ;;  %v1510_v26 = vpop.f32.mrb[9].mxu1 }
 0x969   :  { %v435_v27 = vpop.f32.mrb[10].mxu1 }
 0x96a   :  { %v1412_v28 = vmul.f32 -1.442695, %v438_v25  ;;  %v1511_v29 = vpop.f32.mrb[11].mxu1 }
 0x96b   :  { %v627_v29 = vld [vmem:[#allocation2 + $0x6] sm:$0x1] }
 0x96c   :  { %1626 = vpow2.f32 %v1412_v28 }
 0x976   :  { %v1627_v30 = vpop.eup %1626 }
 0x977   :  { %v442_v31 = vadd.f32 1.0, %v1627_v30 }
 0x979   :  { %1628 = vrcp.f32 %v442_v31 }
 0x983   :  { %v1629_v32 = vpop.eup %1628 }
 0x984   :  { %v445_v33 = vmul.f32 2.0, %v1629_v32  ;;  %v447_v38 = vmul.f32 %v1629_v32, %v378_v17 }
 0x986   :  { %v1413_v34 = vadd.f32 -1.0, %v445_v33 }
 0x988   :  { %449 = vrot.lane.b32.xlu1 %v1413_v34, %s1706_s2 }
 0x9fa   :  { %v450_v35 = vpop.permute.xlu1 %449 }
 0x9fb   :  { %v452_v36 = vmul.f32 %v1629_v32, %v450_v35 }
 0x9fd   :  { %454 = vrot.lane.b32.xlu0 %v452_v36, %s1707_s19 }
 0xa6f   :  { %v455_v39 = vpop.permute.xlu0 %454 }
 0xa70   :  { %v457_v40 = vadd.f32 %v455_v39, %v447_v38 }
 0xa72   :  { %1630 = vtanh.f32 %v457_v40 }
 0xa7c   :  { %v1631_v41 = vpop.eup %1630 }
 0xa7d   :  { %460 = vrot.lane.b32.xlu1 %v1631_v41, %s1706_s2 }
 0xaef   :  { %v461_v42 = vpop.permute.xlu1 %460 }
 0xaf0   :  { %v1888_v43 = vmul.f32 %v1629_v32, %v461_v42 }
 0xaf2   :  { %v470_v44 = vpack.c.bf16 %v1888_v43, %v1888_v43 }
 0xaf4   :  { %472 = vrot.lane.b32.xlu0 %v470_v44, %s1707_s19 }
 0xb66   :  { %v473_v45 = vpop.permute.xlu0 %472 }
 0xb67   :  { %1517 = vmatmul.mubr.msk.bf16.vlgmr.msra.gmra.mrb[8].mxu0 %vm148_vm1, %v473_v45 }
 0xb68   :  { %1529 = vmatpush3.bf16.msra.mxu0 %v1794_v3  ;;  %1532 = vmatprep.mubr.msk.bf16.mxu0 %vm1705_vm0, %v1704_v1 }
 0xb69   :  { %1530 = vmatprep.subr.bf16.mxu0 %v1704_v1 }
 0xb6c   :  { %1531 = vmatpush3.bf16.msra.mxu0 %v1804_v5 }
 0xb6d   :  { %1544 = vmatprep.subr.mxu0 %v1704_v1 }
 0xc3a   :  { %v511_v47 = vpop.f32.mrb[8].mxu0 }
 0xc3b   :  { %v517_v48 = vadd.f32 %v511_v47, %v469_v46  ;;  %v1518_v49 = vpop.f32.mrb[9].mxu0 }
 0xc3c   :  { %v514_v50 = vpop.f32.mrb[10].mxu0 }
 0xc3d   :  { %v1415_v51 = vmul.f32 -1.442695, %v517_v48  ;;  %v1519_v52 = vpop.f32.mrb[11].mxu0 }
 0xc3f   :  { %1632 = vpow2.f32 %v1415_v51 }
 0xc49   :  { %v1633_v53 = vpop.eup %1632 }
 0xc4a   :  { %v521_v54 = vadd.f32 1.0, %v1633_v53  ;;  %v706_v53 = vld [vmem:[#allocation2 + $0x7] sm:$0x1] }
 0xc4c   :  { %1634 = vrcp.f32 %v521_v54 }
 0xc56   :  { %v1635_v55 = vpop.eup %1634 }
 0xc57   :  { %v524_v56 = vmul.f32 2.0, %v1635_v55  ;;  %v526_v61 = vmul.f32 %v1635_v55, %v457_v40 }
 0xc59   :  { %v1416_v57 = vadd.f32 -1.0, %v524_v56 }
 0xc5b   :  { %528 = vrot.lane.b32.xlu1 %v1416_v57, %s1706_s2 }
 0xccd   :  { %v529_v58 = vpop.permute.xlu1 %528 }
 0xcce   :  { %v531_v60 = vmul.f32 %v1635_v55, %v529_v58 }
 0xcd0   :  { %533 = vrot.lane.b32.xlu0 %v531_v60, %s1707_s19 }
 0xd42   :  { %v534_v62 = vpop.permute.xlu0 %533 }
 0xd43   :  { %v536_v63 = vadd.f32 %v534_v62, %v526_v61 }
 0xd45   :  { %1636 = vtanh.f32 %v536_v63 }
 0xd4f   :  { %v1637_v0 = vpop.eup %1636 }
 0xd50   :  { %539 = vrot.lane.b32.xlu1 %v1637_v0, %s1706_s2 }
 0xdc2   :  { %v540_v2 = vpop.permute.xlu1 %539 }
 0xdc3   :  { %v1903_v4 = vmul.f32 %v1635_v55, %v540_v2 }
 0xdc5   :  { %v549_v6 = vpack.c.bf16 %v1903_v4, %v1903_v4 }
 0xdc7   :  { %551 = vrot.lane.b32.xlu0 %v549_v6, %s1707_s19 }
 0xe39   :  { %v552_v7 = vpop.permute.xlu0 %551 }
 0xe3a   :  { %1525 = vmatmul.mubr.msk.bf16.vlgmr.msra.gmra.mrb[12].mxu1 %vm148_vm1, %v552_v7 }
 0xe3b   :  { %1537 = vmatpush3.bf16.msra.mxu1 %v1794_v3  ;;  %1540 = vmatprep.mubr.msk.bf16.mxu1 %vm1705_vm0, %v1704_v1 }
 0xe3c   :  { %1538 = vmatprep.subr.bf16.mxu1 %v1704_v1 }
 0xe3f   :  { %1539 = vmatpush3.bf16.msra.mxu1 %v1804_v5 }
 0xf0d   :  { %v590_v9 = vpop.f32.mrb[12].mxu1 }
 0xf0e   :  { %v596_v10 = vadd.f32 %v590_v9, %v548_v8  ;;  %v1526_v11 = vpop.f32.mrb[13].mxu1 }
 0xf0f   :  { %v593_v12 = vpop.f32.mrb[14].mxu1 }
 0xf10   :  { %v1418_v13 = vmul.f32 -1.442695, %v596_v10  ;;  %v1527_v14 = vpop.f32.mrb[15].mxu1 }
 0xf12   :  { %1638 = vpow2.f32 %v1418_v13 }
 0xf1c   :  { %v1639_v15 = vpop.eup %1638 }
 0xf1d   :  { %v600_v16 = vadd.f32 1.0, %v1639_v15 }
 0xf1f   :  { %1640 = vrcp.f32 %v600_v16 }
 0xf29   :  { %v1641_v17 = vpop.eup %1640 }
 0xf2a   :  { %v603_v3 = vmul.f32 2.0, %v1641_v17  ;;  %v605_v5 = vmul.f32 %v1641_v17, %v536_v63 }
 0xf2c   :  { %v1419_v18 = vadd.f32 -1.0, %v603_v3 }
 0xf2e   :  { %607 = vrot.lane.b32.xlu1 %v1419_v18, %s1706_s2  ;;  %v874_v18 = vld [vmem:[%s2149_s6 + $0x18] sm:$0xff] }
 0xfa0   :  { %v608_v19 = vpop.permute.xlu1 %607 }
 0xfa1   :  { %v610_v21 = vmul.f32 %v1641_v17, %v608_v19 }
 0xfa3   :  { %612 = vrot.lane.b32.xlu0 %v610_v21, %s1707_s19 }
0x1015   :  { %v613_v22 = vpop.permute.xlu0 %612 }
0x1016   :  { %v615_v23 = vadd.f32 %v613_v22, %v605_v5  ;;  %v786_v5 = vlaneseq }
0x1018   :  { %1642 = vtanh.f32 %v615_v23  ;;  %v1963_v22 = vshrl.u32 %v786_v5, 7 }
0x1022   :  { %v1643_v24 = vpop.eup %1642 }
0x1023   :  { %618 = vrot.lane.b32.xlu1 %v1643_v24, %s1706_s2 }
0x1095   :  { %v619_v25 = vpop.permute.xlu1 %618 }
0x1096   :  { %v1917_v26 = vmul.f32 %v1641_v17, %v619_v25  ;;  %v871_v25 = vld [vmem:[%s2149_s6] sm:$0xff] }
0x1098   :  { %v628_v27 = vpack.c.bf16 %v1917_v26, %v1917_v26 }
0x109a   :  { %630 = vrot.lane.b32.xlu0 %v628_v27, %s1707_s19 }
0x110c   :  { %v631_v28 = vpop.permute.xlu0 %630 }
0x110d   :  { %1533 = vmatmul.mubr.msk.bf16.vlgmr.msra.gmra.mrb[12].mxu0 %vm148_vm1, %v631_v28 }
0x110e   :  { %1546 = vmatprep.mubr.msk.f32.mxu0 %vm1705_vm0, %v1704_v1 }
0x11e0   :  { %v669_v30 = vpop.f32.mrb[12].mxu0 }
0x11e1   :  { %v675_v31 = vadd.f32 %v669_v30, %v627_v29  ;;  %v1534_v32 = vpop.f32.mrb[13].mxu0 }
0x11e2   :  { %v672_v33 = vpop.f32.mrb[14].mxu0 }
0x11e3   :  { %v1421_v34 = vmul.f32 -1.442695, %v675_v31  ;;  %v1535_v35 = vpop.f32.mrb[15].mxu0 }
0x11e4   :  { %v1710_v35 = vmov -10000.0  }
0x11e5   :  { %1644 = vpow2.f32 %v1421_v34  ;;  %v1982_v34 = vld [vmem:[%s2151_s8] sm:$0xff] }
0x11ef   :  { %v1645_v36 = vpop.eup %1644 }
0x11f0   :  { %v679_v38 = vadd.f32 1.0, %v1645_v36 }
0x11f2   :  { %1646 = vrcp.f32 %v679_v38 }
0x11fc   :  { %v1647_v39 = vpop.eup %1646 }
0x11fd   :  { %v682_v40 = vmul.f32 2.0, %v1647_v39  ;;  %v684_v45 = vmul.f32 %v1647_v39, %v615_v23  ;;  %v1965_v23 = vand.u32 127, %v786_v5 }
0x11ff   :  { %v1422_v41 = vadd.f32 -1.0, %v682_v40  ;;  %v790_v24 = vadd.s32 %v1965_v23, %v1963_v22  ;;  %vm1066_vm7 = vcmp.eq.s32.totalorder %v1965_v23, 3  ;;  %v1429_v40 = vld [vmem:[%s2150_s7] ss:$0 sm:$0xff]  ;;  %vm1032_vm9 = vcmp.eq.s32.totalorder %v1963_v22, %v1965_v23 }
0x1200   :  { %v1067_v36 = vsel %vm1066_vm7, 0.0, %v1710_v35 }
0x1201   :  { %686 = vrot.lane.b32.xlu1 %v1422_v41, %s1706_s2  ;;  %vm791_vm4 = vcmp.eq.s32.totalorder %v790_v24, 7  ;;  %v1068_v38 = vadd.f32 %v1067_v36, %v1982_v34 }
0x1202   :  { %v792_v27 = vsel %vm791_vm4, 1.0, %v1704_v1 }
0x1273   :  { %v687_v42 = vpop.permute.xlu1 %686 }
0x1274   :  { %v689_v44 = vmul.f32 %v1647_v39, %v687_v42 }
0x1276   :  { %691 = vrot.lane.b32.xlu0 %v689_v44, %s1707_s19  ;;  %v1044_v44 = vsub.s32 2, %v1963_v22 }
0x12e8   :  { %v692_v46 = vpop.permute.xlu0 %691 }
0x12e9   :  { %v694_v47 = vadd.f32 %v692_v46, %v684_v45  ;;  %v1035_v45 = vsub.s32 0, %v1963_v22  ;;  %v1052_v46 = vsub.s32 4, %v1963_v22 }
0x12eb   :  { %1648 = vtanh.f32 %v694_v47 }
0x12f5   :  { %v1649_v48 = vpop.eup %1648 }
0x12f6   :  { %697 = vrot.lane.b32.xlu1 %v1649_v48, %s1706_s2 }
0x1368   :  { %v698_v49 = vpop.permute.xlu1 %697 }
0x1369   :  { %v700_v50 = vmul.f32 %v1647_v39, %v698_v49 }
0x136b   :  { %v707_v51 = vpack.c.bf16 %v700_v50, %v700_v50 }
0x136d   :  { %709 = vrot.lane.b32.xlu0 %v707_v51, %s1707_s19  ;;  %v1060_v51 = vsub.s32 6, %v1963_v22 }
0x13df   :  { %v710_v52 = vpop.permute.xlu0 %709 }
0x13e0   :  { %1541 = vmatmul.mubr.msk.bf16.vlgmr.msra.gmra.mrb[16].mxu1 %vm148_vm1, %v710_v52 }
0x13e1   :  { %1553 = vmatprep.mubr.msk.f32.mxu1 %vm1705_vm0, %v1704_v1 }
0x14b3   :  { %v748_v54 = vpop.f32.mrb[16].mxu1 }
0x14b4   :  { %v754_v55 = vadd.f32 %v748_v54, %v706_v53  ;;  %v1542_v56 = vpop.f32.mrb[17].mxu1 }
0x14b5   :  { %v751_v57 = vpop.f32.mrb[18].mxu1 }
0x14b6   :  { %v1424_v58 = vmul.f32 -1.442695, %v754_v55  ;;  %v1543_v60 = vpop.f32.mrb[19].mxu1 }
0x14b8   :  { %1650 = vpow2.f32 %v1424_v58 }
0x14c2   :  { %v1651_v61 = vpop.eup %1650 }
0x14c3   :  { %v758_v62 = vadd.f32 1.0, %v1651_v61 }
0x14c5   :  { %1652 = vrcp.f32 %v758_v62 }
0x14cf   :  { %v1653_v63 = vpop.eup %1652 }
0x14d0   :  { %v761_v0 = vmul.f32 2.0, %v1653_v63  ;;  %v763_v8 = vmul.f32 %v1653_v63, %v694_v47 }
0x14d2   :  { %v1425_v2 = vadd.f32 -1.0, %v761_v0 }
0x14d4   :  { %765 = vrot.lane.b32.xlu1 %v1425_v2, %s1706_s2 }
0x1546   :  { %v766_v6 = vpop.permute.xlu1 %765 }
0x1547   :  { %v768_v7 = vmul.f32 %v1653_v63, %v766_v6 }
0x1549   :  { %770 = vrot.lane.b32.xlu0 %v768_v7, %s1707_s19 }
0x154d   :  { %227 = vrot.lane.b32.xlu0 %v1843_v37, %s1707_s19 }
0x1551   :  { %386 = vrot.lane.b32.xlu0 %v1873_v20, %s1707_s19 }
0x1555   :  { %544 = vrot.lane.b32.xlu0 %v1903_v4, %s1707_s19 }
0x1559   :  { %702 = vrot.lane.b32.xlu0 %v700_v50, %s1707_s19 }
0x15bb   :  { %v771_v9 = vpop.permute.xlu0 %770 }
0x15bc   :  { %v773_v10 = vadd.f32 %v771_v9, %v763_v8 }
0x15be   :  { %1654 = vtanh.f32 %v773_v10 }
0x15bf   :  { %v228_v11 = vpop.permute.xlu0 %227 }
0x15c0   :  { %231 = vst.msk [vmem:[#allocation3] sm:$0x1] %vm230_vm3, %v228_v11 }
0x15c3   :  { %v387_v12 = vpop.permute.xlu0 %386 }
0x15c4   :  { %389 = vst.msk [vmem:[#allocation3 + $0x2] sm:$0x1] %vm230_vm3, %v387_v12 }
0x15c7   :  { %v545_v37 = vpop.permute.xlu0 %544 }
0x15c8   :  { %v1655_v13 = vpop.eup %1654  ;;  %547 = vst.msk [vmem:[#allocation3 + $0x4] sm:$0x1] %vm230_vm3, %v545_v37 }
0x15c9   :  { %776 = vrot.lane.b32.xlu1 %v1655_v13, %s1706_s2  ;;  %v1096_v13 = vsub.s32 1, %v1963_v22  ;;  %s1711_s2 = smov [#allocation4]  }
0x15ca   :  { %s1371_s4 = sshll.u32 %s1711_s2, 4  ;;  %s1372_s4 = int_to_ptr.vmem [resolvable:$true] %s1371_s4 }
0x15cb   :  { %v703_v20 = vpop.permute.xlu0 %702  ;;  %s1656_s18 = scalar_lea.vmem %s1372_s4, 16  ;;  %p1661_p1 = scmp.lt.s32.totalorder %s1372_s4, %s1372_s4 }
0x15cc   :  { %705 = vst.msk [vmem:[#allocation3 + $0x6] sm:$0x1] %vm230_vm3, %v703_v20  ;;  %p1657_p0 = scmp.ne.s32.totalorder %s1372_s4, %s1656_s18 }
0x15cd   :  { %307 = vrot.lane.b32.xlu1 %v1858_v59, %s1707_s19  ;;  %v1708_v59 = vmov 0.0|0.0  }
0x15ce   :  { %1563 = vmatprep.subr.bf16.mxu1 %v1708_v59 }
0x15d1   :  { %465 = vrot.lane.b32.xlu1 %v1888_v43, %s1707_s19  ;;  %v873_v43 = vld [vmem:[%s2149_s6 + $0x10] sm:$0xff] }
0x15d2   :  { %v1564_v19 = vpack.c.bf16 %v874_v18, %v873_v43 }
0x15d4   :  { %1565 = vmatpush3.bf16.msra.mxu1 %v1564_v19 }
0x15d5   :  { %623 = vrot.lane.b32.xlu1 %v1917_v26, %s1707_s19  ;;  %v872_v26 = vld [vmem:[%s2149_s6 + $0x8] sm:$0xff] }
0x15d6   :  { %v1567_v28 = vpack.c.bf16 %v872_v26, %v871_v25  ;;  %v1132_v26 = vsub.s32 3, %v1963_v22 }
0x163b   :  { %v777_v4 = vpop.permute.xlu1 %776 }
0x163c   :  { %v779_v14 = vmul.f32 %v1653_v63, %v777_v4  ;;  %v1031_v63 = vld [vmem:[%s2152_s9] sm:$0xff] }
0x163e   :  { %781 = vrot.lane.b32.xlu1 %v779_v14, %s1707_s19  ;;  %s1660_s19 = scalar_lea.vmem %s1372_s4, 32 }
0x163f   :  { %v308_v15 = vpop.permute.xlu1 %307  ;;  %p1662_p2 = scmp.lt.s32.totalorder %s1660_s19, %s1656_s18 }
0x1640   :  { %310 = vst.msk [vmem:[#allocation3 + $0x1] sm:$0x1] %vm230_vm3, %v308_v15 }
0x1641   :  { %p1663_p3 = por %p1662_p2, %p1661_p1 }
0x1643   :  { %v466_v16 = vpop.permute.xlu1 %465  ;;  %p1664_p4 = pnand %p1663_p3, %p1657_p0 }
0x1644   :  { %468 = vst.msk [vmem:[#allocation3 + $0x3] sm:$0x1] %vm230_vm3, %v466_v16 }
0x1647   :  { %v624_v17 = vpop.permute.xlu1 %623 }
0x1648   :  { %626 = vst.msk [vmem:[#allocation3 + $0x5] sm:$0x1] %vm230_vm3, %v624_v17 }
0x16b0   :  { %v782_v3 = vpop.permute.xlu1 %781 }
0x16b1   :  { %784 = vst.msk [vmem:[#allocation3 + $0x7] sm:$0x1] %vm230_vm3, %v782_v3 }
0x16b8   :  { %v785_v21 = vld [vmem:[#allocation3] sm:$0xff] }
0x16b9   :  { %794 = vrot.lane.b32.xlu0 %v785_v21, %s1709_s23 }
0x172b   :  { %v795_v29 = vpop.permute.xlu0 %794 }
0x172c   :  { %1545 = vmatpush3.msra.mxu0 %v795_v29 }
0x172d   :  { %1547 = vmatmul.mubr.msk.f32.vlgmr.msra.gmra.mrb[16].mxu0 %vm797_vm5, %v792_v27  ;;  %1566 = vmatprep.subr.bf16.mxu0 %v1708_v59 }
0x172e   :  { %1568 = vmatpush3.bf16.msra.mxu0 %v1567_v28  ;;  %1560 = vmatprep.mubr.msk.f32.mxu0 %vm1705_vm0, %v1704_v1  ;;  %v1069_v1 = vsel %vm1038_vm8, %v1068_v38, -inf }
0x172f   :  { %1070 = vmax.xlane.f32.xlu0 %v1069_v1 }
0x1731   :  { %1561 = vmatmul.mubr.msk.f32.vlgmr.msra.gmra.mrb[18].mxu0 %vm875_vm6, %v785_v21 }
0x17bc   :  { %v1071_v62 = vpop.xlane.xlu0 %1070 }
0x1800   :  { %v867_v30 = vpop.f32.mrb[16].mxu0 }
0x1801   :  { %1554 = vmatmul.mubr.msk.f32.vlgmr.msra.gmra.mrb[20].mxu1 %vm875_vm6, %v867_v30  ;;  %v1548_v31 = vpop.f32.mrb[17].mxu0 }
0x1804   :  { %v1017_v32 = vpop.f32.mrb[18].mxu0 }
0x1805   :  { %v1562_v33 = vpop.f32.mrb[19].mxu0 }
0x18d4   :  { %v945_v39 = vpop.f32.mrb[20].mxu1 }
0x18d5   :  { %v1018_v41 = vadd.f32 %v1017_v32, %v945_v39  ;;  %v1555_v42 = vpop.f32.mrb[21].mxu1 }
0x18d7   :  { %v1992_v47 = vadd.f32 %v1429_v40, %v1018_v41 }
0x18d9   :  { %v1045_v48 = vrot.slane %v1992_v47, %v1044_v44  ;;  %v1036_v49 = vrot.slane %v1992_v47, %v1035_v45  ;;  %v1053_v50 = vrot.slane %v1992_v47, %v1052_v46  ;;  %v1061_v57 = vrot.slane %v1992_v47, %v1060_v51 }
0x18da   :  { %v1168_v44 = vsub.s32 5, %v1963_v22 }
0x18db   :  { %v1046_v52 = vsel %vm1032_vm9, %v1045_v48, 0.0  ;;  %v1037_v53 = vsel %vm1032_vm9, %v1036_v49, 0.0  ;;  %v1054_v56 = vsel %vm1032_vm9, %v1053_v50, 0.0  ;;  %v1062_v60 = vsel %vm1032_vm9, %v1061_v57, 0.0 }
0x18dc   :  { %v1047_v54 = vsel %vm1038_vm8, %v1046_v52, 0.0  ;;  %v1039_v55 = vsel %vm1038_vm8, %v1037_v53, 0.0  ;;  %v1055_v58 = vsel %vm1038_vm8, %v1054_v56, 0.0  ;;  %v1063_v61 = vsel %vm1038_vm8, %v1062_v60, 0.0 }
0x18dd   :  { %1048 = vadd.xlane.f32.xlu0 %v1047_v54  ;;  %1040 = vadd.xlane.f32.xlu1 %v1039_v55  ;;  %vm1252_vm9 = vcmask 57400  }
0x18e1   :  { %1056 = vadd.xlane.f32.xlu0 %v1055_v58 }
0x18e5   :  { %1064 = vadd.xlane.f32.xlu0 %v1063_v61 }
0x196a   :  { %v1041_v0 = vpop.xlane.xlu1 %1040  ;;  %v1049_v16 = vpop.xlane.xlu0 %1048 }
0x196b   :  { %v1072_v2 = vadd.f32 %v1071_v62, %v1041_v0 }
0x196d   :  { %v2008_v6 = vadd.f32 %v1072_v2, %v1031_v63 }
0x196e   :  { %v1057_v31 = vpop.xlane.xlu0 %1056 }
0x196f   :  { %v1074_v7 = vsel %vm1038_vm8, %v2008_v6, -inf }
0x1970   :  { %v1075_v8 = vrot.slane %v1074_v7, 4 }
0x1972   :  { %v1076_v9 = vmax.f32 %v1074_v7, %v1075_v8  ;;  %v1065_v50 = vpop.xlane.xlu0 %1064 }
0x1974   :  { %v1077_v10 = vrot.slane %v1076_v9, 2 }
0x1976   :  { %v1078_v11 = vmax.f32 %v1076_v9, %v1077_v10 }
0x1978   :  { %v1079_v12 = vrot.slane %v1078_v11, 1 }
0x197a   :  { %v2012_v37 = vmax.f32 %v1078_v11, %v1079_v12 }
0x197c   :  { %vm1081_vm10 = vcmp.eq.f32.partialorder %v2008_v6, %v2012_v37  ;;  %v1093_v20 = vadd.f32 %v2012_v37, %v1992_v47 }
0x197e   :  { %v1097_v4 = vrot.slane %v1093_v20, %v1096_v13 }
0x1980   :  { %v2020_v14 = vadd.f32 %v1097_v4, %v1982_v34 }
0x1982   :  { %v1099_v15 = vsel %vm1038_vm8, %v2020_v14, -inf }
0x1983   :  { %1100 = vmax.xlane.f32.xlu1 %v1099_v15 }
0x1a10   :  { %v2024_v17 = vpop.xlane.xlu1 %1100 }
0x1a11   :  { %v1108_v59 = vadd.f32 %v2024_v17, %v1049_v16 }
0x1a13   :  { %v2027_v3 = vadd.f32 %v1108_v59, %v1031_v63 }
0x1a15   :  { %v1110_v43 = vsel %vm1038_vm8, %v2027_v3, -inf }
0x1a16   :  { %v1111_v18 = vrot.slane %v1110_v43, 4 }
0x1a18   :  { %v1112_v19 = vmax.f32 %v1110_v43, %v1111_v18 }
0x1a1a   :  { %v1113_v21 = vrot.slane %v1112_v19, 2 }
0x1a1c   :  { %v1114_v5 = vmax.f32 %v1112_v19, %v1113_v21 }
0x1a1e   :  { %v1115_v24 = vrot.slane %v1114_v5, 1 }
0x1a20   :  { %v2031_v25 = vmax.f32 %v1114_v5, %v1115_v24 }
0x1a22   :  { %vm1117_vm11 = vcmp.eq.f32.partialorder %v2027_v3, %v2031_v25  ;;  %v1129_v27 = vadd.f32 %v2031_v25, %v1992_v47 }
0x1a24   :  { %v1133_v28 = vrot.slane %v1129_v27, %v1132_v26 }
0x1a26   :  { %v2039_v29 = vadd.f32 %v1133_v28, %v1982_v34 }
0x1a28   :  { %v1135_v30 = vsel %vm1038_vm8, %v2039_v29, -inf }
0x1a29   :  { %1136 = vmax.xlane.f32.xlu1 %v1135_v30 }
0x1ab6   :  { %v2043_v32 = vpop.xlane.xlu1 %1136 }
0x1ab7   :  { %v1144_v33 = vadd.f32 %v2043_v32, %v1057_v31 }
0x1ab9   :  { %v2046_v35 = vadd.f32 %v1144_v33, %v1031_v63 }
0x1abb   :  { %v1146_v36 = vsel %vm1038_vm8, %v2046_v35, -inf }
0x1abc   :  { %v1147_v38 = vrot.slane %v1146_v36, 4 }
0x1abe   :  { %v1148_v1 = vmax.f32 %v1146_v36, %v1147_v38 }
0x1ac0   :  { %v1149_v39 = vrot.slane %v1148_v1, 2 }
0x1ac2   :  { %v1150_v40 = vmax.f32 %v1148_v1, %v1149_v39 }
0x1ac4   :  { %v1151_v41 = vrot.slane %v1150_v40, 1 }
0x1ac6   :  { %v2050_v42 = vmax.f32 %v1150_v40, %v1151_v41 }
0x1ac8   :  { %vm1153_vm12 = vcmp.eq.f32.partialorder %v2046_v35, %v2050_v42  ;;  %v1165_v45 = vadd.f32 %v2050_v42, %v1992_v47 }
0x1aca   :  { %v1169_v46 = vrot.slane %v1165_v45, %v1168_v44 }
0x1acc   :  { %v2058_v48 = vadd.f32 %v1169_v46, %v1982_v34  ;;  %v1430_v34 = vld [vmem:[%s2153_s10] ss:$0 sm:$0xff] }
0x1ace   :  { %v1171_v49 = vsel %vm1038_vm8, %v2058_v48, -inf }
0x1acf   :  { %1172 = vmax.xlane.f32.xlu1 %v1171_v49 }
0x1b5c   :  { %v2062_v51 = vpop.xlane.xlu1 %1172 }
0x1b5d   :  { %v1180_v52 = vadd.f32 %v2062_v51, %v1065_v50 }
0x1b5f   :  { %v1181_v53 = vadd.f32 %v1180_v52, %v1031_v63 }
0x1b61   :  { %v1182_v54 = vsel %vm1038_vm8, %v1181_v53, -inf }
0x1b62   :  { %v1183_v55 = vrot.slane %v1182_v54, 4 }
0x1b64   :  { %v1184_v56 = vmax.f32 %v1182_v54, %v1183_v55 }
0x1b66   :  { %v1185_v57 = vrot.slane %v1184_v56, 2 }
0x1b68   :  { %v1186_v58 = vmax.f32 %v1184_v56, %v1185_v57  ;;  %v2082_v57 = vcvt.s32.f32 %v1965_v23 }
0x1b6a   :  { %v1187_v60 = vrot.slane %v1186_v58, 1 }
0x1b6c   :  { %v1188_v61 = vmax.f32 %v1186_v58, %v1187_v60 }
0x1b6e   :  { %vm1189_vm13 = vcmp.eq.f32.partialorder %v1181_v53, %v1188_v61  ;;  %v1201_v62 = vadd.f32 %v1188_v61, %v1992_v47 }
0x1b6f   :  { %v1190_v38 = vsel %vm1189_vm13, %v1963_v22, 5  ;;  %vm1174_vm13 = vcmp.eq.f32.partialorder %v2058_v48, %v2062_v51 }
0x1b70   :  { %v1209_v0 = vadd.f32 %v1430_v34, %v1201_v62  ;;  %v1191_v1 = vsel %vm1038_vm8, %v1190_v38, 2147483647  ;;  %v1175_v58 = vsel %vm1174_vm13, %v2082_v57, 5.0 }
0x1b71   :  { %v1192_v39 = vrot.slane %v1191_v1, 4  ;;  %v1176_v60 = vsel %vm1038_vm8, %v1175_v58, inf }
0x1b72   :  { %v1211_v2 = vsel %vm1210_vm14, %v1209_v0, -inf }
0x1b73   :  { %1212 = vmax.xlane.f32.xlu0 %v1211_v2  ;;  %vm1193_vm5 = vcmp.lt.s32.totalorder %v1191_v1, %v1192_v39 }
0x1b74   :  { %v1194_v40 = vsel %vm1193_vm5, %v1191_v1, %v1192_v39  ;;  %vm1283_vm5 = vcmask 41000  }
0x1b75   :  { %v1195_v41 = vrot.slane %v1194_v40, 2 }
0x1b77   :  { %vm1196_vm6 = vcmp.lt.s32.totalorder %v1194_v40, %v1195_v41 }
0x1b78   :  { %v1197_v44 = vsel %vm1196_vm6, %v1194_v40, %v1195_v41 }
0x1b79   :  { %v1198_v45 = vrot.slane %v1197_v44, 1 }
0x1b7b   :  { %vm1199_vm7 = vcmp.lt.s32.totalorder %v1197_v44, %v1198_v45 }
0x1b7c   :  { %v1200_v49 = vsel %vm1199_vm7, %v1197_v44, %v1198_v45  ;;  %vm1302_vm7 = vcmask 32800  }
0x1c00   :  { %v1213_v63 = vpop.xlane.xlu0 %1212 }
0x1c01   :  { %v1214_v7 = vrot.slane %v1213_v63, 4 }
0x1c03   :  { %v1215_v8 = vmax.f32 %v1213_v63, %v1214_v7 }
0x1c05   :  { %v1216_v9 = vrot.slane %v1215_v8, 2 }
0x1c07   :  { %v1217_v10 = vmax.f32 %v1215_v8, %v1216_v9 }
0x1c09   :  { %v1218_v11 = vrot.slane %v1217_v10, 1 }
0x1c0b   :  { %v1219_v12 = vmax.f32 %v1217_v10, %v1218_v11 }
0x1c0d   :  { %1575 = vpush %v1219_v12 }
0x1c3e   :  { %s1576_s14 = spop %1575 }
0x1c3f   :  { %v1221_v13 = vstv %s1576_s14 }
0x1c40   :  { %vm1222_vm0 = vcmp.eq.f32.partialorder %v1209_v0, %v1221_v13  ;;  %1250 = vst.msk [vmem:[#allocation4] sm:$0x1] %vm1249_vm15, %v1221_v13 }
0x1c41   :  { %v1223_v47 = vsel %vm1222_vm0, %v1965_v23, 5  ;;  %vm1271_vm0 = vcmask 49200  }
0x1c42   :  { %v1224_v20 = vsel %vm1210_vm14, %v1223_v47, 2147483647 }
0x1c43   :  { %v1226_v4 = vshra.s32 %v1224_v20, 16  ;;  %v1225_v16 = vand.u32 65535, %v1224_v20 }
0x1c45   :  { %v1228_v15 = vcvt.s32.f32 %v1226_v4  ;;  %v1227_v43 = vcvt.s32.f32 %v1225_v16  ;;  %v1154_v4 = vsel %vm1153_vm12, %v1963_v22, 5  ;;  %vm1138_vm12 = vcmp.eq.f32.partialorder %v2039_v29, %v2043_v32 }
0x1c47   :  { %1229 = vmin.xlane.f32.xlu1 %v1228_v15 }
0x1cd4   :  { %v1230_v59 = vpop.xlane.xlu1 %1229 }
0x1cd5   :  { %vm1231_vm1 = vcmp.eq.f32.partialorder %v1228_v15, %v1230_v59  ;;  %v1236_v19 = vcvt.f32.s32 %v1230_v59  ;;  %v1155_v15 = vsel %vm1038_vm8, %v1154_v4, 2147483647 }
0x1cd6   :  { %v1232_v18 = vsel %vm1231_vm1, %v1227_v43, inf  ;;  %v1156_v16 = vrot.slane %v1155_v15, 4 }
0x1cd7   :  { %1233 = vmin.xlane.f32.xlu0 %v1232_v18  ;;  %v1237_v5 = vshll.u32 %v1236_v19, 16 }
0x1d64   :  { %v1234_v21 = vpop.xlane.xlu0 %1233 }
0x1d65   :  { %v1235_v24 = vcvt.f32.s32 %v1234_v21 }
0x1d67   :  { %v1238_v26 = vadd.s32 %v1237_v5, %v1235_v24 }
0x1d69   :  { %v1239_v27 = vrot.slane %v1238_v26, 4 }
0x1d6b   :  { %vm1240_vm2 = vcmp.lt.s32.totalorder %v1238_v26, %v1239_v27 }
0x1d6c   :  { %v1241_v28 = vsel %vm1240_vm2, %v1238_v26, %v1239_v27  ;;  %vm1157_vm2 = vcmp.lt.s32.totalorder %v1155_v15, %v1156_v16 }
0x1d6d   :  { %v1242_v30 = vrot.slane %v1241_v28, 2  ;;  %v1158_v59 = vsel %vm1157_vm2, %v1155_v15, %v1156_v16 }
0x1d6e   :  { %v1159_v43 = vrot.slane %v1158_v59, 2 }
0x1d6f   :  { %vm1243_vm3 = vcmp.lt.s32.totalorder %v1241_v28, %v1242_v30 }
0x1d70   :  { %v1244_v31 = vsel %vm1243_vm3, %v1241_v28, %v1242_v30  ;;  %vm1160_vm3 = vcmp.lt.s32.totalorder %v1158_v59, %v1159_v43  ;;  %v1139_v30 = vsel %vm1138_vm12, %v2082_v57, 5.0 }
0x1d71   :  { %v1245_v33 = vrot.slane %v1244_v31, 1  ;;  %v1161_v18 = vsel %vm1160_vm3, %v1158_v59, %v1159_v43  ;;  %vm1333_vm3 = vcmask 16400  }
0x1d72   :  { %v1162_v19 = vrot.slane %v1161_v18, 1 }
0x1d73   :  { %vm1246_vm4 = vcmp.lt.s32.totalorder %v1244_v31, %v1245_v33 }
0x1d74   :  { %v1247_v36 = vsel %vm1246_vm4, %v1244_v31, %v1245_v33  ;;  %vm1163_vm4 = vcmp.lt.s32.totalorder %v1161_v18, %v1162_v19  ;;  %v1140_v31 = vsel %vm1038_vm8, %v1139_v30, inf }
0x1d75   :  { %1577 = vpush %v1247_v36  ;;  %v1164_v5 = vsel %vm1163_vm4, %v1161_v18, %v1162_v19 }
0x1da6   :  { %s1578_s10 = spop %1577 }
0x1da7   :  { %v1251_v46 = vstv %s1578_s10 }
0x1da8   :  { %1253 = vst.msk [vmem:[#allocation6] sm:$0x1] %vm1252_vm9, %v1251_v46  ;;  %vm1254_vm14 = vcmp.eq.s32.totalorder %v1965_v23, %v1251_v46 }
0x1da9   :  { %v1255_v50 = vsel %vm1254_vm14, %v1200_v49, 0 }
0x1daa   :  { %v1256_v52 = vsel %vm1038_vm8, %v1255_v50, 0 }
0x1dab   :  { %v1258_v53 = vshrl.u32 %v1256_v52, 16  ;;  %v1257_v54 = vand.u32 65535, %v1256_v52 }
0x1dad   :  { %v1260_v55 = vcvt.s32.f32 %v1258_v53  ;;  %v1259_v56 = vcvt.s32.f32 %v1257_v54 }
0x1daf   :  { %1263 = vadd.xlane.f32.xlu1 %v1260_v55  ;;  %1261 = vadd.xlane.f32.xlu0 %v1259_v56  ;;  %v1118_v55 = vsel %vm1117_vm11, %v1963_v22, 5  ;;  %vm1102_vm11 = vcmp.eq.f32.partialorder %v2020_v14, %v2024_v17 }
0x1db0   :  { %v1119_v56 = vsel %vm1038_vm8, %v1118_v55, 2147483647 }
0x1db1   :  { %v1120_v58 = vrot.slane %v1119_v56, 4 }
0x1db3   :  { %1177 = vmin.xlane.f32.xlu1 %v1176_v60  ;;  %vm1121_vm14 = vcmp.lt.s32.totalorder %v1119_v56, %v1120_v58 }
0x1db4   :  { %v1122_v60 = vsel %vm1121_vm14, %v1119_v56, %v1120_v58 }
0x1e3c   :  { %v1264_v61 = vpop.xlane.xlu1 %1263  ;;  %v1262_v34 = vpop.xlane.xlu0 %1261 }
0x1e3d   :  { %v1266_v62 = vcvt.f32.s32 %v1264_v61  ;;  %v1265_v2 = vcvt.f32.s32 %v1262_v34  ;;  %v1123_v61 = vrot.slane %v1122_v60, 2 }
0x1e3f   :  { %v1267_v0 = vshll.u32 %v1266_v62, 16  ;;  %vm1124_vm13 = vcmp.lt.s32.totalorder %v1122_v60, %v1123_v61 }
0x1e40   :  { %v1178_v48 = vpop.xlane.xlu1 %1177  ;;  %v1125_v34 = vsel %vm1124_vm13, %v1122_v60, %v1123_v61 }
0x1e41   :  { %v1268_v63 = vadd.s32 %v1267_v0, %v1265_v2  ;;  %v1573_v51 = vtrunc.f32 %v1178_v48  ;;  %v1126_v62 = vrot.slane %v1125_v34, 1 }
0x1e43   :  { %1579 = vpush %v1268_v63  ;;  %v1574_v7 = vcvt.f32.s32 %v1573_v51 }
0x1e74   :  { %s1580_s15 = spop %1579 }
0x1e75   :  { %v1270_v8 = vstv %s1580_s15 }
0x1e76   :  { %1272 = vst.msk [vmem:[#allocation6] sm:$0x1] %vm1271_vm0, %v1270_v8  ;;  %vm1273_vm1 = vcmp.eq.s32.totalorder %v1963_v22, %v1270_v8  ;;  %vm1127_vm0 = vcmp.lt.s32.totalorder %v1125_v34, %v1126_v62  ;;  %v1103_v8 = vsel %vm1102_vm11, %v2082_v57, 5.0 }
0x1e77   :  { %v1274_v9 = vsel %vm1273_vm1, %v1574_v7, 0  ;;  %vm1314_vm1 = vcmask 24600   ;;  %v1128_v2 = vsel %vm1127_vm0, %v1125_v34, %v1126_v62 }
0x1e78   :  { %v1275_v10 = vrot.slane %v1274_v9, 4 }
0x1e7a   :  { %v1276_v11 = vadd.s32 %v1275_v10, %v1274_v9  ;;  %v1104_v9 = vsel %vm1038_vm8, %v1103_v8, inf }
0x1e7c   :  { %v1277_v12 = vrot.slane %v1276_v11, 2 }
0x1e7e   :  { %v1278_v13 = vadd.s32 %v1277_v12, %v1276_v11 }
0x1e80   :  { %v1279_v47 = vrot.slane %v1278_v13, 1 }
0x1e82   :  { %v1280_v20 = vadd.s32 %v1279_v47, %v1278_v13 }
0x1e84   :  { %1581 = vpush %v1280_v20 }
0x1eb5   :  { %s1582_s16 = spop %1581 }
0x1eb6   :  { %v1282_v21 = vstv %s1582_s16 }
0x1eb7   :  { %1284 = vst.msk [vmem:[#allocation6] sm:$0x1] %vm1283_vm5, %v1282_v21  ;;  %vm1285_vm6 = vcmp.eq.s32.totalorder %v1965_v23, %v1282_v21 }
0x1eb8   :  { %v1286_v24 = vsel %vm1285_vm6, %v1164_v5, 0  ;;  %v1082_v5 = vsel %vm1081_vm10, %v1963_v22, 5 }
0x1eb9   :  { %v1287_v35 = vsel %vm1038_vm8, %v1286_v24, 0  ;;  %v1083_v24 = vsel %vm1038_vm8, %v1082_v5, 2147483647 }
0x1eba   :  { %v1289_v42 = vshrl.u32 %v1287_v35, 16  ;;  %v1288_v26 = vand.u32 65535, %v1287_v35  ;;  %v1084_v35 = vrot.slane %v1083_v24, 4 }
0x1ebc   :  { %v1291_v27 = vcvt.s32.f32 %v1289_v42  ;;  %v1290_v28 = vcvt.s32.f32 %v1288_v26  ;;  %vm1085_vm5 = vcmp.lt.s32.totalorder %v1083_v24, %v1084_v35 }
0x1ebd   :  { %v1086_v42 = vsel %vm1085_vm5, %v1083_v24, %v1084_v35 }
0x1ebe   :  { %1294 = vadd.xlane.f32.xlu0 %v1291_v27  ;;  %1292 = vadd.xlane.f32.xlu1 %v1290_v28  ;;  %v1087_v26 = vrot.slane %v1086_v42, 2 }
0x1ec0   :  { %vm1088_vm6 = vcmp.lt.s32.totalorder %v1086_v42, %v1087_v26 }
0x1ec1   :  { %v1089_v27 = vsel %vm1088_vm6, %v1086_v42, %v1087_v26 }
0x1ec2   :  { %1141 = vmin.xlane.f32.xlu0 %v1140_v31  ;;  %v1090_v28 = vrot.slane %v1089_v27, 1 }
0x1ec4   :  { %vm1091_vm12 = vcmp.lt.s32.totalorder %v1089_v27, %v1090_v28 }
0x1ec5   :  { %v1092_v31 = vsel %vm1091_vm12, %v1089_v27, %v1090_v28 }
0x1f4b   :  { %v1295_v33 = vpop.xlane.xlu0 %1294  ;;  %v1293_v36 = vpop.xlane.xlu1 %1292 }
0x1f4c   :  { %v1297_v38 = vcvt.f32.s32 %v1295_v33  ;;  %v1296_v39 = vcvt.f32.s32 %v1293_v36 }
0x1f4e   :  { %v1298_v1 = vshll.u32 %v1297_v38, 16 }
0x1f4f   :  { %v1142_v41 = vpop.xlane.xlu0 %1141 }
0x1f50   :  { %v1299_v40 = vadd.s32 %v1298_v1, %v1296_v39  ;;  %v1571_v44 = vtrunc.f32 %v1142_v41 }
0x1f52   :  { %1583 = vpush %v1299_v40  ;;  %v1572_v29 = vcvt.f32.s32 %v1571_v44 }
0x1f83   :  { %s1584_s3 = spop %1583 }
0x1f84   :  { %v1301_v32 = vstv %s1584_s3 }
0x1f85   :  { %1303 = vst.msk [vmem:[#allocation6] sm:$0x1] %vm1302_vm7, %v1301_v32  ;;  %vm1304_vm9 = vcmp.eq.s32.totalorder %v1963_v22, %v1301_v32  ;;  %vm1345_vm7 = vcmask 8200  }
0x1f86   :  { %v1305_v45 = vsel %vm1304_vm9, %v1572_v29, 0 }
0x1f87   :  { %v1306_v46 = vrot.slane %v1305_v45, 4 }
0x1f89   :  { %v1307_v49 = vadd.s32 %v1306_v46, %v1305_v45 }
0x1f8b   :  { %v1308_v50 = vrot.slane %v1307_v49, 2 }
0x1f8d   :  { %v1309_v52 = vadd.s32 %v1308_v50, %v1307_v49 }
0x1f8f   :  { %v1310_v53 = vrot.slane %v1309_v52, 1 }
0x1f91   :  { %v1311_v54 = vadd.s32 %v1310_v53, %v1309_v52 }
0x1f93   :  { %1585 = vpush %v1311_v54 }
0x1fc4   :  { %s1586_s17 = spop %1585 }
0x1fc5   :  { %v1313_v0 = vstv %s1586_s17 }
0x1fc6   :  { %1315 = vst.msk [vmem:[#allocation6] sm:$0x1] %vm1314_vm1, %v1313_v0  ;;  %vm1316_vm2 = vcmp.eq.s32.totalorder %v1965_v23, %v1313_v0 }
0x1fc7   :  { %v1317_v63 = vsel %vm1316_vm2, %v1128_v2, 0 }
0x1fc8   :  { %v1318_v3 = vsel %vm1038_vm8, %v1317_v63, 0 }
0x1fc9   :  { %v1320_v25 = vshrl.u32 %v1318_v3, 16  ;;  %v1319_v48 = vand.u32 65535, %v1318_v3 }
0x1fcb   :  { %v1322_v51 = vcvt.s32.f32 %v1320_v25  ;;  %v1321_v7 = vcvt.s32.f32 %v1319_v48 }
0x1fcd   :  { %1325 = vadd.xlane.f32.xlu1 %v1322_v51  ;;  %1323 = vadd.xlane.f32.xlu0 %v1321_v7 }
0x1fd1   :  { %1105 = vmin.xlane.f32.xlu1 %v1104_v9 }
0x205a   :  { %v1326_v10 = vpop.xlane.xlu1 %1325  ;;  %v1324_v11 = vpop.xlane.xlu0 %1323 }
0x205b   :  { %v1328_v12 = vcvt.f32.s32 %v1326_v10  ;;  %v1327_v47 = vcvt.f32.s32 %v1324_v11 }
0x205d   :  { %v1329_v13 = vshll.u32 %v1328_v12, 16 }
0x205e   :  { %v1106_v4 = vpop.xlane.xlu1 %1105 }
0x205f   :  { %v1330_v20 = vadd.s32 %v1329_v13, %v1327_v47  ;;  %v1569_v15 = vtrunc.f32 %v1106_v4 }
0x2061   :  { %1587 = vpush %v1330_v20  ;;  %v1570_v14 = vcvt.f32.s32 %v1569_v15 }
0x2092   :  { %s1588_s0 = spop %1587 }
0x2093   :  { %v1332_v17 = vstv %s1588_s0 }
0x2094   :  { %1334 = vst.msk [vmem:[#allocation6] sm:$0x1] %vm1333_vm3, %v1332_v17  ;;  %vm1335_vm4 = vcmp.eq.s32.totalorder %v1963_v22, %v1332_v17 }
0x2095   :  { %v1336_v57 = vsel %vm1335_vm4, %v1570_v14, 0 }
0x2096   :  { %v1337_v16 = vrot.slane %v1336_v57, 4 }
0x2098   :  { %v1338_v59 = vadd.s32 %v1337_v16, %v1336_v57 }
0x209a   :  { %v1339_v43 = vrot.slane %v1338_v59, 2 }
0x209c   :  { %v1340_v18 = vadd.s32 %v1339_v43, %v1338_v59 }
0x209e   :  { %v1341_v19 = vrot.slane %v1340_v18, 1 }
0x20a0   :  { %v1342_v21 = vadd.s32 %v1341_v19, %v1340_v18 }
0x20a2   :  { %1589 = vpush %v1342_v21 }
0x20d3   :  { %s1590_s1 = spop %1589 }
0x20d4   :  { %v1344_v30 = vstv %s1590_s1 }
0x20d5   :  { %1346 = vst.msk [vmem:[#allocation6] sm:$0x1] %vm1345_vm7, %v1344_v30  ;;  %vm1347_vm9 = vcmp.eq.s32.totalorder %v1965_v23, %v1344_v30 }
0x20d6   :  { %v1348_v33 = vsel %vm1347_vm9, %v1092_v31, 0 }
0x20d7   :  { %v1349_v22 = vsel %vm1038_vm8, %v1348_v33, 0 }
0x20d8   :  { %v1351_v6 = vshrl.u32 %v1349_v22, 16  ;;  %v1350_v37 = vand.u32 65535, %v1349_v22 }
0x20da   :  { %v1353_v36 = vcvt.s32.f32 %v1351_v6  ;;  %v1352_v38 = vcvt.s32.f32 %v1350_v37 }
0x20dc   :  { %1356 = vadd.xlane.f32.xlu0 %v1353_v36  ;;  %1354 = vadd.xlane.f32.xlu1 %v1352_v38 }
0x20dd   :  { %1667 = shalt.err (!%p1664_p4)
}
0x20de   :  { %s1668_s21 = scalar_lea.hbm %s2154_s11, 16 }
0x20df   :  { %p1669_p5 = scmp.ne.s32.totalorder %s2154_s11, %s1668_s21  ;;  %p1672_p6 = scmp.lt.u32.totalorder %s1668_s21, %s2154_s11 }
0x20e1   :  { %p1674_p7 = pnand %p1672_p6, %p1669_p5 }
0x20e3   :  { %1677 = shalt.err (!%p1674_p7)
}
0x20e4   :  { %1374 = dma.vmem_to_hbm [thread:$0]  %s1372_s4, 16, %s2154_s11, [#allocation5]  }
0x20e5   :  { %s1712_s6 = smov [#allocation6]  }
0x20e6   :  { %s1381_s28 = sshll.u32 %s1712_s6, 4  ;;  %s1382_s28 = int_to_ptr.vmem [resolvable:$true] %s1381_s28 }
0x20e7   :  { %s1678_s30 = scalar_lea.vmem %s1382_s28, 16  ;;  %s1682_s7 = scalar_lea.vmem %s1382_s28, 32 }
0x20e8   :  { %p1679_p8 = scmp.ne.s32.totalorder %s1382_s28, %s1678_s30  ;;  %p1683_p9 = scmp.lt.s32.totalorder %s1382_s28, %s1382_s28 }
0x20e9   :  { %p1684_p10 = scmp.lt.s32.totalorder %s1682_s7, %s1678_s30 }
0x20eb   :  { %p1685_p11 = por %p1684_p10, %p1683_p9 }
0x20ed   :  { %p1686_p12 = pnand %p1685_p11, %p1679_p8 }
0x2169   :  { %v1357_v23 = vpop.xlane.xlu0 %1356  ;;  %v1355_v1 = vpop.xlane.xlu1 %1354 }
0x216a   :  { %v1359_v39 = vcvt.f32.s32 %v1357_v23  ;;  %v1358_v41 = vcvt.f32.s32 %v1355_v1 }
0x216c   :  { %v1360_v40 = vshll.u32 %v1359_v39, 16 }
0x216e   :  { %v1361_v44 = vadd.s32 %v1360_v40, %v1358_v41 }
0x2170   :  { %1591 = vpush %v1361_v44 }
0x21a1   :  { %s1592_s29 = spop %1591 }
0x21a2   :  { %v1363_v29 = vstv %s1592_s29 }
0x21a3   :  { %1364 = vst.msk [vmem:[#allocation6] sm:$0x1] %vm1249_vm15, %v1363_v29 }
0x21a4   :  { %1689 = shalt.err (!%p1686_p12)
}
0x21a5   :  { %s1690_s9 = scalar_lea.hbm %s2155_s12, 16 }
0x21a6   :  { %p1691_p13 = scmp.ne.s32.totalorder %s2155_s12, %s1690_s9  ;;  %p1694_p0 = scmp.lt.u32.totalorder %s1690_s9, %s2155_s12 }
0x21a8   :  { %p1696_p1 = pnand %p1694_p0, %p1691_p13 }
0x21aa   :  { %1699 = shalt.err (!%p1696_p1)
}
0x21ab   :  { %1384 = dma.vmem_to_hbm [thread:$0]  %s1382_s28, 16, %s2155_s12, [#allocation7]  }
0x21ac   :  { %1700 = dma.done.wait [#allocation5], 16  }
0x21ad   :  { %1701 = vsyncadd [#allocation5], 4294967280 }
0x21ae   :  { %1702 = dma.done.wait [#allocation7], 16  }
0x21af   :  { %1703 = vsyncadd [#allocation7], 4294967280 }
0x21b0   :  { %1391 = vsyncpa [#allocation5], 1 }
0x21b1   :  { %1392 = vsyncpa [#allocation7], 1 }

</bundles_post_ra>
